<compile_context>
chip_gen: v7x
topology: tpu7x:2x2x1
jax: 0.10.0
libtpu: 0.0.40
codegen_flags: <defaults>
</compile_context>

<pallas_src>
import math
import functools

import jax
import jax.numpy as jnp
from jax import lax
from jax.experimental import pallas as pl
from jax.experimental.pallas import tpu as pltpu

NEG = -1e30  # large-negative stand-in for -inf (exp underflows to exactly 0 in f32)


# ----------------------------------------------------------------------------
# Fused MaskedCausalAttention kernel: one (b_blk*T, h_dim) row slab per step.
# ----------------------------------------------------------------------------
def mca_kernel(x_ref,
               qkv_w_ref, qkv_b_ref,
               dc_l1_w_ref, dc_l1_b_ref,
               dc_lw_w_ref, dc_lw_b_ref,
               dc_l2_w_ref, dc_l2_b_ref, dc_bias_ref,
               fmlp_w_ref, fmlp_b_ref,
               fl_w_ref, fl_b_ref,
               proj_w_ref, proj_b_ref,
               o_ref,
               *, attdim, convdim, n_heads, wshare, ksize, b_blk, seq_len):
    T = seq_len
    R = b_blk * T
    cdt = qkv_w_ref.dtype            # MXU-operand dtype (bf16 on the fast path)

    x = x_ref[...]                   # (R, h_dim) f32
    x1c = x[:, :attdim].astype(cdt)  # attention-branch input (MXU operand)
    x2c = x[:, attdim:].astype(cdt)  # conv-branch input      (MXU operand)

    # ---------------- attention branch: fused QKV, batched over b_blk --------
    dh = attdim // n_heads
    scale = 1.0 / math.sqrt(dh)
    qkv = jnp.dot(x1c, qkv_w_ref[...],
                  preferred_element_type=jnp.float32) + qkv_b_ref[...]       # (R, 3*attdim) f32
    qkv3 = qkv.astype(cdt).reshape(b_blk, T, 3 * attdim)

    row = lax.broadcasted_iota(jnp.int32, (T, T), 0)
    col = lax.broadcasted_iota(jnp.int32, (T, T), 1)
    causal = (col <= row)[None]                                              # (1, T, T)

    head_outs = []
    for h in range(n_heads):
        lo = h * dh
        qh = qkv3[:, :, lo:lo + dh]
        kh = qkv3[:, :, attdim + lo:attdim + lo + dh]
        vh = qkv3[:, :, 2 * attdim + lo:2 * attdim + lo + dh]
        s = jnp.einsum("bqd,bkd->bqk", qh, kh,
                       preferred_element_type=jnp.float32) * scale           # (b_blk,T,T) f32
        s = jnp.where(causal, s, NEG)
        m = jnp.max(s, axis=-1, keepdims=True)
        p = jnp.exp(s - m)                                                   # f32, exact zeros
        l = jnp.sum(p, axis=-1, keepdims=True)
        acc = jnp.einsum("bqk,bkd->bqd", p.astype(cdt), vh,
                         preferred_element_type=jnp.float32)
        # normalize AFTER the PV matmul (scale (T,dh) instead of (T,T))
        head_outs.append((acc * pl.reciprocal(l, approx=True)).reshape(R, dh))
    att = jnp.concatenate(head_outs, axis=1)                                 # (R, attdim) f32

    # ---------------- DynamicConvolution branch ------------------------------
    dc = convdim // wshare
    off = (ksize - 1) // 2
    n_taps = off + 1     # taps j > off carry exactly-zero weight (causal kernel mask)

    xg2 = jnp.dot(x2c, dc_l1_w_ref[...],
                  preferred_element_type=jnp.float32) + dc_l1_b_ref[...]     # (R, 2C)
    xg = xg2[:, :convdim] * jax.nn.sigmoid(xg2[:, convdim:])                 # GLU -> (R, C) f32
    w = jnp.dot(xg.astype(cdt), dc_lw_w_ref[...],
                preferred_element_type=jnp.float32) + dc_lw_b_ref[...]       # (R, wshare*k) f32

    # Valid band taps: source position s = t + j - off must satisfy 0 <= s <= t.
    t_idx = lax.broadcasted_iota(jnp.int32, (b_blk, T, ksize), 1).reshape(R, ksize)
    j_idx = lax.broadcasted_iota(jnp.int32, (R, ksize), 1)
    valid = (j_idx <= off) & (t_idx + j_idx - off >= 0)

    # Per-head tap softmax, kept in f32 so masked taps get exactly-zero weight.
    tap_p = []
    for h in range(wshare):
        logits = jnp.where(valid, w[:, h * ksize:(h + 1) * ksize], NEG)      # (R, k)
        m = jnp.max(logits, axis=-1, keepdims=True)
        e = jnp.exp(logits - m)
        tap_p.append(e * pl.reciprocal(jnp.sum(e, axis=-1, keepdims=True), approx=True))

    # Lane-dense FMA over taps.  Shifted GLU activations come from a sublane roll
    # (XLU slot): shifted[r] == xg[r + j - off]; rows that wrap across the batch /
    # block boundary only ever multiply exactly-zero tap weights.
    y = jnp.zeros((R, convdim), jnp.float32)
    for j in range(n_taps):
        shifted = xg if j == off else pltpu.roll(xg, off - j, axis=0)
        rep = jnp.concatenate(
            [jnp.broadcast_to(tap_p[h][:, j:j + 1], (R, dc)) for h in range(wshare)],
            axis=1)                                                          # (R, convdim)
        y = y + rep * shifted

    y = y + dc_bias_ref[...]
    conv = jnp.dot(y.astype(cdt), dc_l2_w_ref[...],
                   preferred_element_type=jnp.float32) + dc_l2_b_ref[...]    # (R, C) f32

    # ---------------- gating tail: fmlp -> ReLU -> fl -> softmax gate -> proj
    a2 = jnp.concatenate([att, conv], axis=1)                                # (R, h_dim) f32
    xbar = jnp.maximum(
        jnp.dot(a2.astype(cdt), fmlp_w_ref[...],
                preferred_element_type=jnp.float32) + fmlp_b_ref[...], 0.0)
    z = jnp.dot(xbar.astype(cdt), fl_w_ref[...],
                preferred_element_type=jnp.float32) + fl_b_ref[...]          # (R, h_dim)
    m = jnp.max(z, axis=-1, keepdims=True)
    e = jnp.exp(z - m)
    # approx reciprocal: rel err ~2^-12, well inside eval tolerance.
    xf = e * pl.reciprocal(jnp.sum(e, axis=-1, keepdims=True), approx=True)
    gated = xf * a2
    o_ref[...] = jnp.dot(gated.astype(cdt), proj_w_ref[...],
                         preferred_element_type=jnp.float32) + proj_b_ref[...]


def masked_causal_attention(params, x, cfg, *, block_b=8, compute_dtype=jnp.bfloat16):
    """Fused forward of MaskedCausalAttention (eval mode), one pallas_call."""
    B, T, hd = x.shape
    attdim = cfg["h_dim"] - cfg["convdim"]
    convdim = cfg["convdim"]
    n_heads = cfg["n_heads"]
    wshare = convdim // 4
    ksize = cfg["kernelsize"]
    assert attdim > 0 and attdim % n_heads == 0 and convdim % wshare == 0

    # Batch blocking: process b_blk batch elements (b_blk*T rows) per grid step.
    b_blk = max(d for d in range(1, min(block_b, B) + 1) if B % d == 0)
    rows_blk = b_blk * T
    assert rows_blk % 8 == 0 or B // b_blk == 1, "row block should fill sublanes"

    weight_names = ["qkv_w", "qkv_b",
                    "dc_l1_w", "dc_l1_b", "dc_lw_w", "dc_lw_b",
                    "dc_l2_w", "dc_l2_b", "dc_bias",
                    "fmlp_w", "fmlp_b", "fl_w", "fl_b", "proj_w", "proj_b"]
    # Matmul weights go in as MXU-operand dtype (bf16 on v6e/v7x path); biases
    # stay f32 and are added to the f32 accumulators inside the kernel.
    weights = [params[n].astype(compute_dtype) if n.endswith("_w") else params[n]
               for n in weight_names]

    kern = functools.partial(mca_kernel, attdim=attdim, convdim=convdim,
                             n_heads=n_heads, wshare=wshare, ksize=ksize,
                             b_blk=b_blk, seq_len=T)

    in_specs = [pl.BlockSpec((rows_blk, hd), lambda b: (b, 0))]
    in_specs += [pl.BlockSpec(wt.shape, lambda b: (0, 0)) for wt in weights]

    out2d = pl.pallas_call(
        kern,
        grid=(B // b_blk,),
        in_specs=in_specs,
        out_specs=pl.BlockSpec((rows_blk, hd), lambda b: (b, 0)),
        out_shape=jax.ShapeDtypeStruct((B * T, hd), jnp.float32),
        compiler_params=pltpu.CompilerParams(
            dimension_semantics=("parallel",)),
    )(x.reshape(B * T, hd), *weights)
    return out2d.reshape(B, T, hd)


# ----------------------------------------------------------------------------
# Pure-JAX reference (mirrors the PyTorch ops) for correctness checking.
# ----------------------------------------------------------------------------
def mca_reference(p, x, cfg):
    B, T, hd = x.shape
    attdim = cfg["h_dim"] - cfg["convdim"]
    convdim = cfg["convdim"]
    n_heads = cfg["n_heads"]
    dh = attdim // n_heads
    hs = convdim // 4
    dc = convdim // hs
    k = cfg["kernelsize"]
    off = (k - 1) // 2

    x1, x2 = x[..., :attdim], x[..., attdim:]

    # attention branch
    qkv = x1 @ p["qkv_w"] + p["qkv_b"]
    q, kk, v = jnp.split(qkv, 3, axis=-1)
    split_heads = lambda z: z.reshape(B, T, n_heads, dh).transpose(0, 2, 1, 3)
    qh, kh, vh = split_heads(q), split_heads(kk), split_heads(v)
    s = jnp.einsum("bntd,bnsd->bnts", qh, kh) / math.sqrt(dh)
    causal = jnp.tril(jnp.ones((T, T), dtype=bool))
    s = jnp.where(causal[None, None], s, -jnp.inf)
    pa = jax.nn.softmax(s, axis=-1)
    att = jnp.einsum("bnts,bnsd->bntd", pa, vh).transpose(0, 2, 1, 3).reshape(B, T, attdim)

    # DynamicConvolution branch (dense banded construction, as in the PyTorch code)
    xg2 = x2 @ p["dc_l1_w"] + p["dc_l1_b"]
    xg = xg2[..., :convdim] * jax.nn.sigmoid(xg2[..., convdim:])
    w = (xg @ p["dc_lw_w"] + p["dc_lw_b"]).reshape(B, T, hs, k).transpose(0, 2, 1, 3)
    t_idx = jnp.arange(T)
    band = jnp.full((B, hs, T, T), -jnp.inf)
    for j in range(k):
        s_idx = t_idx + j - off
        hit = (s_idx[:, None] == t_idx[None, :]) & ((s_idx >= 0) & (s_idx < T))[:, None]
        band = jnp.where(hit[None, None], w[..., j:j + 1], band)
    band = jnp.where(causal[None, None], band, -jnp.inf)   # use_kernel_mask=True
    pc = jax.nn.softmax(band, axis=-1)
    xh = xg.reshape(B, T, hs, dc).transpose(0, 2, 1, 3)
    y = jnp.einsum("bhts,bhsd->bhtd", pc, xh).transpose(0, 2, 1, 3).reshape(B, T, convdim)
    y = y + p["dc_bias"]
    conv = y @ p["dc_l2_w"] + p["dc_l2_b"]

    # gating tail + projection
    a2 = jnp.concatenate([att, conv], axis=-1)
    xbar = jax.nn.relu(a2 @ p["fmlp_w"] + p["fmlp_b"])
    z = xbar @ p["fl_w"] + p["fl_b"]
    xf = jax.nn.softmax(z, axis=-1)
    return (xf * a2) @ p["proj_w"] + p["proj_b"]


# ----------------------------------------------------------------------------
# Deterministic parameter construction (xavier-uniform weights, small biases;
# Q/K/V and fl1/fl2 are stored pre-fused).
# ----------------------------------------------------------------------------
def init_params(key, cfg):
    h = cfg["h_dim"]
    convdim = cfg["convdim"]
    attdim = h - convdim
    hs = convdim // 4
    k = cfg["kernelsize"]

    keys = iter(jax.random.split(key, 32))

    def xavier(fan_in, fan_out):
        a = math.sqrt(6.0 / (fan_in + fan_out))
        return jax.random.uniform(next(keys), (fan_in, fan_out), jnp.float32, -a, a)

    def lin(fan_in, fan_out):
        w = xavier(fan_in, fan_out)
        b = jax.random.uniform(next(keys), (1, fan_out), jnp.float32, -0.1, 0.1)
        return w, b

    p = {}
    qw, qb = lin(attdim, attdim)
    kw, kb = lin(attdim, attdim)
    vw, vb = lin(attdim, attdim)
    p["qkv_w"] = jnp.concatenate([qw, kw, vw], axis=1)     # fused QKV
    p["qkv_b"] = jnp.concatenate([qb, kb, vb], axis=1)

    p["fmlp_w"], p["fmlp_b"] = lin(h, h // 2)
    f1w, f1b = lin(h // 2, attdim)
    f2w, f2b = lin(h // 2, convdim)
    p["fl_w"] = jnp.concatenate([f1w, f2w], axis=1)        # fused fl1|fl2
    p["fl_b"] = jnp.concatenate([f1b, f2b], axis=1)
    p["proj_w"], p["proj_b"] = lin(h, h)

    p["dc_l1_w"], p["dc_l1_b"] = lin(convdim, 2 * convdim)
    p["dc_l2_w"], p["dc_l2_b"] = lin(convdim, convdim)
    p["dc_lw_w"], p["dc_lw_b"] = lin(convdim, hs * k)
    p["dc_bias"] = jax.random.uniform(next(keys), (1, convdim), jnp.float32, -0.1, 0.1)
    return p


# ----------------------------------------------------------------------------
if __name__ == "__main__":
    cfg = dict(h_dim=32, n_heads=2, kernelsize=3, convdim=8)
    B, T = 8, 8

    root = jax.random.PRNGKey(0)
    kp, kx = jax.random.split(root)
    params = init_params(kp, cfg)
    x = jax.random.normal(kx, (B, T, cfg["h_dim"]), jnp.float32)

    ref = mca_reference(params, x, cfg)

    # 1) strict-parity f32 path (same math as the PyTorch graph).
    fwd32 = jax.jit(lambda p, xx: masked_causal_attention(
        p, xx, cfg, block_b=4, compute_dtype=jnp.float32))
    out32 = jax.block_until_ready(fwd32(params, x))
    assert out32.shape == (B, T, cfg["h_dim"])
    assert bool(jnp.all(jnp.isfinite(out32)))
    err32 = float(jnp.max(jnp.abs(out32 - ref)))
    assert bool(jnp.allclose(out32, ref, rtol=2e-2, atol=2e-2)), \
        f"f32 mismatch, max abs err={err32}"

    # 2) bf16-MXU-operand path (v6e/v7x fast path; f32 accumulation + f32 softmax math).
    fwd16 = jax.jit(lambda p, xx: masked_causal_attention(
        p, xx, cfg, block_b=4, compute_dtype=jnp.bfloat16))
    out16 = jax.block_until_ready(fwd16(params, x))
    assert out16.shape == (B, T, cfg["h_dim"])
    assert bool(jnp.all(jnp.isfinite(out16)))
    err16 = float(jnp.max(jnp.abs(out16 - ref)))
    assert bool(jnp.allclose(out16, ref, rtol=6e-2, atol=6e-2)), \
        f"bf16 mismatch, max abs err={err16}"

    print("KERNEL_OK")
</pallas_src>

<mosaic_0001>
module attributes {stable_mosaic.version = 11 : i64} {
  func.func @mca_kernel(%arg0: i32, %arg1: memref<32x32xf32, #tpu.memory_space<vmem>>, %arg2: memref<24x72xf32, #tpu.memory_space<vmem>>, %arg3: memref<1x72xf32, #tpu.memory_space<vmem>>, %arg4: memref<8x16xf32, #tpu.memory_space<vmem>>, %arg5: memref<1x16xf32, #tpu.memory_space<vmem>>, %arg6: memref<8x6xf32, #tpu.memory_space<vmem>>, %arg7: memref<1x6xf32, #tpu.memory_space<vmem>>, %arg8: memref<8x8xf32, #tpu.memory_space<vmem>>, %arg9: memref<1x8xf32, #tpu.memory_space<vmem>>, %arg10: memref<1x8xf32, #tpu.memory_space<vmem>>, %arg11: memref<32x16xf32, #tpu.memory_space<vmem>>, %arg12: memref<1x16xf32, #tpu.memory_space<vmem>>, %arg13: memref<16x32xf32, #tpu.memory_space<vmem>>, %arg14: memref<1x32xf32, #tpu.memory_space<vmem>>, %arg15: memref<32x32xf32, #tpu.memory_space<vmem>>, %arg16: memref<1x32xf32, #tpu.memory_space<vmem>>, %arg17: memref<32x32xf32, #tpu.memory_space<vmem>>) attributes {dimension_semantics = [#tpu.dimension_semantics<parallel>], iteration_bounds = array<i64: 2>, scalar_prefetch = 0 : i64, scratch_operands = 0 : i64, tpu.core_type = #tpu.core_type<tc>, window_params = [{transform_indices = @transform_0, window_bounds = array<i64: 32, 32>}, {pipeline_mode = #tpu.pipeline_mode<synchronous>, transform_indices = @transform_1, window_bounds = array<i64: 24, 72>}, {pipeline_mode = #tpu.pipeline_mode<synchronous>, transform_indices = @transform_2, window_bounds = array<i64: 1, 72>}, {pipeline_mode = #tpu.pipeline_mode<synchronous>, transform_indices = @transform_3, window_bounds = array<i64: 8, 16>}, {pipeline_mode = #tpu.pipeline_mode<synchronous>, transform_indices = @transform_4, window_bounds = array<i64: 1, 16>}, {pipeline_mode = #tpu.pipeline_mode<synchronous>, transform_indices = @transform_5, window_bounds = array<i64: 8, 6>}, {pipeline_mode = #tpu.pipeline_mode<synchronous>, transform_indices = @transform_6, window_bounds = array<i64: 1, 6>}, {pipeline_mode = #tpu.pipeline_mode<synchronous>, transform_indices = @transform_7, window_bounds = array<i64: 8, 8>}, {pipeline_mode = #tpu.pipeline_mode<synchronous>, transform_indices = @transform_8, window_bounds = array<i64: 1, 8>}, {pipeline_mode = #tpu.pipeline_mode<synchronous>, transform_indices = @transform_9, window_bounds = array<i64: 1, 8>}, {pipeline_mode = #tpu.pipeline_mode<synchronous>, transform_indices = @transform_10, window_bounds = array<i64: 32, 16>}, {pipeline_mode = #tpu.pipeline_mode<synchronous>, transform_indices = @transform_11, window_bounds = array<i64: 1, 16>}, {pipeline_mode = #tpu.pipeline_mode<synchronous>, transform_indices = @transform_12, window_bounds = array<i64: 16, 32>}, {pipeline_mode = #tpu.pipeline_mode<synchronous>, transform_indices = @transform_13, window_bounds = array<i64: 1, 32>}, {pipeline_mode = #tpu.pipeline_mode<synchronous>, transform_indices = @transform_14, window_bounds = array<i64: 32, 32>}, {pipeline_mode = #tpu.pipeline_mode<synchronous>, transform_indices = @transform_15, window_bounds = array<i64: 1, 32>}, {transform_indices = @transform_16, window_bounds = array<i64: 32, 32>}]} {
    %c0 = arith.constant 0 : index
    %c0_0 = arith.constant 0 : index
    %0 = vector.load %arg1[%c0, %c0_0] : memref<32x32xf32, #tpu.memory_space<vmem>>, vector<32x32xf32>
    %1 = vector.extract_strided_slice %0 {offsets = [0, 0], sizes = [32, 24], strides = [1, 1]} : vector<32x32xf32> to vector<32x24xf32>
    %2 = vector.extract_strided_slice %0 {offsets = [0, 24], sizes = [32, 8], strides = [1, 1]} : vector<32x32xf32> to vector<32x8xf32>
    %c0_1 = arith.constant 0 : index
    %c0_2 = arith.constant 0 : index
    %3 = vector.load %arg2[%c0_1, %c0_2] : memref<24x72xf32, #tpu.memory_space<vmem>>, vector<24x72xf32>
    %cst = arith.constant dense<0.000000e+00> : vector<32x72xf32>
    %4 = tpu.matmul %1, %3, %cst {dimension_numbers = #tpu.dot_dimension_numbers<[1], [0], [0], [1], [0, 0, 1, 1], [], []>} : vector<32x24xf32>, vector<24x72xf32>, vector<32x72xf32> -> vector<32x72xf32>
    %c0_3 = arith.constant 0 : index
    %c0_4 = arith.constant 0 : index
    %5 = vector.load %arg3[%c0_3, %c0_4] : memref<1x72xf32, #tpu.memory_space<vmem>>, vector<1x72xf32>
    %6 = vector.broadcast %5 : vector<1x72xf32> to vector<32x72xf32>
    %7 = arith.addf %4, %6 : vector<32x72xf32>
    %8 = vector.shape_cast %7 : vector<32x72xf32> to vector<4x8x72xf32>
    %9 = tpu.iota {dimensions = array<i32: 0>} : vector<8x8xi32>
    %10 = tpu.iota {dimensions = array<i32: 1>} : vector<8x8xi32>
    %11 = arith.cmpi sle, %10, %9 : vector<8x8xi32>
    %12 = vector.shape_cast %11 : vector<8x8xi1> to vector<1x8x8xi1>
    %13 = vector.extract_strided_slice %8 {offsets = [0, 0, 0], sizes = [4, 8, 12], strides = [1, 1, 1]} : vector<4x8x72xf32> to vector<4x8x12xf32>
    %14 = vector.extract_strided_slice %8 {offsets = [0, 0, 24], sizes = [4, 8, 12], strides = [1, 1, 1]} : vector<4x8x72xf32> to vector<4x8x12xf32>
    %15 = vector.extract_strided_slice %8 {offsets = [0, 0, 48], sizes = [4, 8, 12], strides = [1, 1, 1]} : vector<4x8x72xf32> to vector<4x8x12xf32>
    "tpu.trace_start"() <{level = 10 : i32, message = "bqd,bkd->bqk"}> : () -> ()
    %cst_5 = arith.constant dense<0.000000e+00> : vector<4x8x8xf32>
    %16 = tpu.matmul %13, %14, %cst_5 {dimension_numbers = #tpu.dot_dimension_numbers<[2], [2], [1], [1], [0, 0, 0, 1, 1, 1], [0], [0]>} : vector<4x8x12xf32>, vector<4x8x12xf32>, vector<4x8x8xf32> -> vector<4x8x8xf32>
    "tpu.trace_stop"() : () -> ()
    %cst_6 = arith.constant 0.288675129 : f32
    %17 = vector.broadcast %cst_6 : f32 to vector<4x8x8xf32>
    %18 = arith.mulf %16, %17 : vector<4x8x8xf32>
    %cst_7 = arith.constant -1.000000e+30 : f32
    %19 = vector.shape_cast %12 : vector<1x8x8xi1> to vector<1x8x8xi1>
    %20 = vector.broadcast %19 : vector<1x8x8xi1> to vector<4x8x8xi1>
    %21 = vector.broadcast %cst_7 : f32 to vector<4x8x8xf32>
    %22 = arith.select %20, %18, %21 : vector<4x8x8xi1>, vector<4x8x8xf32>
    %cst_8 = arith.constant dense<0xFF800000> : vector<4x8xf32>
    %23 = vector.multi_reduction <maximumf>, %22, %cst_8 [2] : vector<4x8x8xf32> to vector<4x8xf32>
    %24 = vector.shape_cast %23 : vector<4x8xf32> to vector<4x8x1xf32>
    %25 = vector.broadcast %24 : vector<4x8x1xf32> to vector<4x8x8xf32>
    %26 = arith.subf %22, %25 : vector<4x8x8xf32>
    %27 = math.exp %26 : vector<4x8x8xf32>
    %cst_9 = arith.constant dense<0.000000e+00> : vector<4x8xf32>
    %28 = vector.multi_reduction <add>, %27, %cst_9 [2] : vector<4x8x8xf32> to vector<4x8xf32>
    %29 = vector.shape_cast %28 : vector<4x8xf32> to vector<4x8x1xf32>
    "tpu.trace_start"() <{level = 10 : i32, message = "bqk,bkd->bqd"}> : () -> ()
    %cst_10 = arith.constant dense<0.000000e+00> : vector<4x8x12xf32>
    %30 = tpu.matmul %27, %15, %cst_10 {dimension_numbers = #tpu.dot_dimension_numbers<[2], [1], [1], [2], [0, 0, 0, 1, 1, 2], [0], [0]>} : vector<4x8x8xf32>, vector<4x8x12xf32>, vector<4x8x12xf32> -> vector<4x8x12xf32>
    "tpu.trace_stop"() : () -> ()
    %31 = tpu.reciprocal %29 {approx = true} : vector<4x8x1xf32> -> vector<4x8x1xf32>
    %32 = vector.broadcast %31 : vector<4x8x1xf32> to vector<4x8x12xf32>
    %33 = arith.mulf %30, %32 : vector<4x8x12xf32>
    %34 = vector.shape_cast %33 : vector<4x8x12xf32> to vector<32x12xf32>
    %35 = vector.extract_strided_slice %8 {offsets = [0, 0, 12], sizes = [4, 8, 12], strides = [1, 1, 1]} : vector<4x8x72xf32> to vector<4x8x12xf32>
    %36 = vector.extract_strided_slice %8 {offsets = [0, 0, 36], sizes = [4, 8, 12], strides = [1, 1, 1]} : vector<4x8x72xf32> to vector<4x8x12xf32>
    %37 = vector.extract_strided_slice %8 {offsets = [0, 0, 60], sizes = [4, 8, 12], strides = [1, 1, 1]} : vector<4x8x72xf32> to vector<4x8x12xf32>
    "tpu.trace_start"() <{level = 10 : i32, message = "bqd,bkd->bqk"}> : () -> ()
    %cst_11 = arith.constant dense<0.000000e+00> : vector<4x8x8xf32>
    %38 = tpu.matmul %35, %36, %cst_11 {dimension_numbers = #tpu.dot_dimension_numbers<[2], [2], [1], [1], [0, 0, 0, 1, 1, 1], [0], [0]>} : vector<4x8x12xf32>, vector<4x8x12xf32>, vector<4x8x8xf32> -> vector<4x8x8xf32>
    "tpu.trace_stop"() : () -> ()
    %cst_12 = arith.constant 0.288675129 : f32
    %39 = vector.broadcast %cst_12 : f32 to vector<4x8x8xf32>
    %40 = arith.mulf %38, %39 : vector<4x8x8xf32>
    %cst_13 = arith.constant -1.000000e+30 : f32
    %41 = vector.shape_cast %12 : vector<1x8x8xi1> to vector<1x8x8xi1>
    %42 = vector.broadcast %41 : vector<1x8x8xi1> to vector<4x8x8xi1>
    %43 = vector.broadcast %cst_13 : f32 to vector<4x8x8xf32>
    %44 = arith.select %42, %40, %43 : vector<4x8x8xi1>, vector<4x8x8xf32>
    %cst_14 = arith.constant dense<0xFF800000> : vector<4x8xf32>
    %45 = vector.multi_reduction <maximumf>, %44, %cst_14 [2] : vector<4x8x8xf32> to vector<4x8xf32>
    %46 = vector.shape_cast %45 : vector<4x8xf32> to vector<4x8x1xf32>
    %47 = vector.broadcast %46 : vector<4x8x1xf32> to vector<4x8x8xf32>
    %48 = arith.subf %44, %47 : vector<4x8x8xf32>
    %49 = math.exp %48 : vector<4x8x8xf32>
    %cst_15 = arith.constant dense<0.000000e+00> : vector<4x8xf32>
    %50 = vector.multi_reduction <add>, %49, %cst_15 [2] : vector<4x8x8xf32> to vector<4x8xf32>
    %51 = vector.shape_cast %50 : vector<4x8xf32> to vector<4x8x1xf32>
    "tpu.trace_start"() <{level = 10 : i32, message = "bqk,bkd->bqd"}> : () -> ()
    %cst_16 = arith.constant dense<0.000000e+00> : vector<4x8x12xf32>
    %52 = tpu.matmul %49, %37, %cst_16 {dimension_numbers = #tpu.dot_dimension_numbers<[2], [1], [1], [2], [0, 0, 0, 1, 1, 2], [0], [0]>} : vector<4x8x8xf32>, vector<4x8x12xf32>, vector<4x8x12xf32> -> vector<4x8x12xf32>
    "tpu.trace_stop"() : () -> ()
    %53 = tpu.reciprocal %51 {approx = true} : vector<4x8x1xf32> -> vector<4x8x1xf32>
    %54 = vector.broadcast %53 : vector<4x8x1xf32> to vector<4x8x12xf32>
    %55 = arith.mulf %52, %54 : vector<4x8x12xf32>
    %56 = vector.shape_cast %55 : vector<4x8x12xf32> to vector<32x12xf32>
    %57 = tpu.concatenate %34, %56 in 1 : vector<32x12xf32>, vector<32x12xf32> -> vector<32x24xf32>
    %c0_17 = arith.constant 0 : index
    %c0_18 = arith.constant 0 : index
    %58 = vector.load %arg4[%c0_17, %c0_18] : memref<8x16xf32, #tpu.memory_space<vmem>>, vector<8x16xf32>
    %cst_19 = arith.constant dense<0.000000e+00> : vector<32x16xf32>
    %59 = tpu.matmul %2, %58, %cst_19 {dimension_numbers = #tpu.dot_dimension_numbers<[1], [0], [0], [1], [0, 0, 1, 1], [], []>} : vector<32x8xf32>, vector<8x16xf32>, vector<32x16xf32> -> vector<32x16xf32>
    %c0_20 = arith.constant 0 : index
    %c0_21 = arith.constant 0 : index
    %60 = vector.load %arg5[%c0_20, %c0_21] : memref<1x16xf32, #tpu.memory_space<vmem>>, vector<1x16xf32>
    %61 = vector.broadcast %60 : vector<1x16xf32> to vector<32x16xf32>
    %62 = arith.addf %59, %61 : vector<32x16xf32>
    %63 = vector.extract_strided_slice %62 {offsets = [0, 0], sizes = [32, 8], strides = [1, 1]} : vector<32x16xf32> to vector<32x8xf32>
    %64 = vector.extract_strided_slice %62 {offsets = [0, 8], sizes = [32, 8], strides = [1, 1]} : vector<32x16xf32> to vector<32x8xf32>
    %65 = arith.negf %64 : vector<32x8xf32>
    %66 = math.exp %65 : vector<32x8xf32>
    %cst_22 = arith.constant 1.000000e+00 : f32
    %67 = vector.broadcast %cst_22 : f32 to vector<32x8xf32>
    %68 = arith.addf %67, %66 : vector<32x8xf32>
    %69 = arith.divf %67, %68 : vector<32x8xf32>
    %70 = arith.mulf %63, %69 : vector<32x8xf32>
    %c0_23 = arith.constant 0 : index
    %c0_24 = arith.constant 0 : index
    %71 = vector.load %arg6[%c0_23, %c0_24] : memref<8x6xf32, #tpu.memory_space<vmem>>, vector<8x6xf32>
    %cst_25 = arith.constant dense<0.000000e+00> : vector<32x6xf32>
    %72 = tpu.matmul %70, %71, %cst_25 {dimension_numbers = #tpu.dot_dimension_numbers<[1], [0], [0], [1], [0, 0, 1, 1], [], []>} : vector<32x8xf32>, vector<8x6xf32>, vector<32x6xf32> -> vector<32x6xf32>
    %c0_26 = arith.constant 0 : index
    %c0_27 = arith.constant 0 : index
    %73 = vector.load %arg7[%c0_26, %c0_27] : memref<1x6xf32, #tpu.memory_space<vmem>>, vector<1x6xf32>
    %74 = vector.broadcast %73 : vector<1x6xf32> to vector<32x6xf32>
    %75 = arith.addf %72, %74 : vector<32x6xf32>
    %76 = tpu.iota {dimensions = array<i32: 1>} : vector<4x8x3xi32>
    %77 = vector.shape_cast %76 : vector<4x8x3xi32> to vector<32x3xi32>
    %78 = tpu.iota {dimensions = array<i32: 1>} : vector<32x3xi32>
    %c1_i32 = arith.constant 1 : i32
    %79 = vector.broadcast %c1_i32 : i32 to vector<32x3xi32>
    %80 = arith.cmpi sle, %78, %79 : vector<32x3xi32>
    %81 = arith.addi %77, %78 : vector<32x3xi32>
    %c1_i32_28 = arith.constant 1 : i32
    %82 = vector.broadcast %c1_i32_28 : i32 to vector<32x3xi32>
    %83 = arith.subi %81, %82 : vector<32x3xi32>
    %c0_i32 = arith.constant 0 : i32
    %84 = vector.broadcast %c0_i32 : i32 to vector<32x3xi32>
    %85 = arith.cmpi sge, %83, %84 : vector<32x3xi32>
    %86 = arith.andi %80, %85 : vector<32x3xi1>
    %87 = vector.extract_strided_slice %75 {offsets = [0, 0], sizes = [32, 3], strides = [1, 1]} : vector<32x6xf32> to vector<32x3xf32>
    %cst_29 = arith.constant -1.000000e+30 : f32
    %88 = vector.broadcast %cst_29 : f32 to vector<32x3xf32>
    %89 = arith.select %86, %87, %88 : vector<32x3xi1>, vector<32x3xf32>
    %cst_30 = arith.constant dense<0xFF800000> : vector<32xf32>
    %90 = vector.multi_reduction <maximumf>, %89, %cst_30 [1] : vector<32x3xf32> to vector<32xf32>
    %91 = vector.shape_cast %90 : vector<32xf32> to vector<32x1xf32>
    %92 = vector.broadcast %91 : vector<32x1xf32> to vector<32x3xf32>
    %93 = arith.subf %89, %92 : vector<32x3xf32>
    %94 = math.exp %93 : vector<32x3xf32>
    %cst_31 = arith.constant dense<0.000000e+00> : vector<32xf32>
    %95 = vector.multi_reduction <add>, %94, %cst_31 [1] : vector<32x3xf32> to vector<32xf32>
    %96 = vector.shape_cast %95 : vector<32xf32> to vector<32x1xf32>
    %97 = tpu.reciprocal %96 {approx = true} : vector<32x1xf32> -> vector<32x1xf32>
    %98 = vector.broadcast %97 : vector<32x1xf32> to vector<32x3xf32>
    %99 = arith.mulf %94, %98 : vector<32x3xf32>
    %100 = vector.extract_strided_slice %75 {offsets = [0, 3], sizes = [32, 3], strides = [1, 1]} : vector<32x6xf32> to vector<32x3xf32>
    %cst_32 = arith.constant -1.000000e+30 : f32
    %101 = vector.broadcast %cst_32 : f32 to vector<32x3xf32>
    %102 = arith.select %86, %100, %101 : vector<32x3xi1>, vector<32x3xf32>
    %cst_33 = arith.constant dense<0xFF800000> : vector<32xf32>
    %103 = vector.multi_reduction <maximumf>, %102, %cst_33 [1] : vector<32x3xf32> to vector<32xf32>
    %104 = vector.shape_cast %103 : vector<32xf32> to vector<32x1xf32>
    %105 = vector.broadcast %104 : vector<32x1xf32> to vector<32x3xf32>
    %106 = arith.subf %102, %105 : vector<32x3xf32>
    %107 = math.exp %106 : vector<32x3xf32>
    %cst_34 = arith.constant dense<0.000000e+00> : vector<32xf32>
    %108 = vector.multi_reduction <add>, %107, %cst_34 [1] : vector<32x3xf32> to vector<32xf32>
    %109 = vector.shape_cast %108 : vector<32xf32> to vector<32x1xf32>
    %110 = tpu.reciprocal %109 {approx = true} : vector<32x1xf32> -> vector<32x1xf32>
    %111 = vector.broadcast %110 : vector<32x1xf32> to vector<32x3xf32>
    %112 = arith.mulf %107, %111 : vector<32x3xf32>
    %cst_35 = arith.constant 0.000000e+00 : f32
    %113 = vector.broadcast %cst_35 : f32 to vector<32x8xf32>
    %c1_i32_36 = arith.constant 1 : i32
    %114 = tpu.dynamic_rotate %70 by %c1_i32_36 dim 0 : vector<32x8xf32>, i32 -> vector<32x8xf32>
    %115 = vector.extract_strided_slice %99 {offsets = [0, 0], sizes = [32, 1], strides = [1, 1]} : vector<32x3xf32> to vector<32x1xf32>
    %116 = vector.shape_cast %115 : vector<32x1xf32> to vector<32x1xf32>
    %117 = vector.broadcast %116 : vector<32x1xf32> to vector<32x4xf32>
    %118 = vector.extract_strided_slice %112 {offsets = [0, 0], sizes = [32, 1], strides = [1, 1]} : vector<32x3xf32> to vector<32x1xf32>
    %119 = vector.shape_cast %118 : vector<32x1xf32> to vector<32x1xf32>
    %120 = vector.broadcast %119 : vector<32x1xf32> to vector<32x4xf32>
    %121 = tpu.concatenate %117, %120 in 1 : vector<32x4xf32>, vector<32x4xf32> -> vector<32x8xf32>
    %122 = arith.mulf %121, %114 : vector<32x8xf32>
    %123 = arith.addf %113, %122 : vector<32x8xf32>
    %124 = vector.extract_strided_slice %99 {offsets = [0, 1], sizes = [32, 1], strides = [1, 1]} : vector<32x3xf32> to vector<32x1xf32>
    %125 = vector.shape_cast %124 : vector<32x1xf32> to vector<32x1xf32>
    %126 = vector.broadcast %125 : vector<32x1xf32> to vector<32x4xf32>
    %127 = vector.extract_strided_slice %112 {offsets = [0, 1], sizes = [32, 1], strides = [1, 1]} : vector<32x3xf32> to vector<32x1xf32>
    %128 = vector.shape_cast %127 : vector<32x1xf32> to vector<32x1xf32>
    %129 = vector.broadcast %128 : vector<32x1xf32> to vector<32x4xf32>
    %130 = tpu.concatenate %126, %129 in 1 : vector<32x4xf32>, vector<32x4xf32> -> vector<32x8xf32>
    %131 = arith.mulf %130, %70 : vector<32x8xf32>
    %132 = arith.addf %123, %131 : vector<32x8xf32>
    %c0_37 = arith.constant 0 : index
    %c0_38 = arith.constant 0 : index
    %133 = vector.load %arg10[%c0_37, %c0_38] : memref<1x8xf32, #tpu.memory_space<vmem>>, vector<1x8xf32>
    %134 = vector.broadcast %133 : vector<1x8xf32> to vector<32x8xf32>
    %135 = arith.addf %132, %134 : vector<32x8xf32>
    %c0_39 = arith.constant 0 : index
    %c0_40 = arith.constant 0 : index
    %136 = vector.load %arg8[%c0_39, %c0_40] : memref<8x8xf32, #tpu.memory_space<vmem>>, vector<8x8xf32>
    %cst_41 = arith.constant dense<0.000000e+00> : vector<32x8xf32>
    %137 = tpu.matmul %135, %136, %cst_41 {dimension_numbers = #tpu.dot_dimension_numbers<[1], [0], [0], [1], [0, 0, 1, 1], [], []>} : vector<32x8xf32>, vector<8x8xf32>, vector<32x8xf32> -> vector<32x8xf32>
    %c0_42 = arith.constant 0 : index
    %c0_43 = arith.constant 0 : index
    %138 = vector.load %arg9[%c0_42, %c0_43] : memref<1x8xf32, #tpu.memory_space<vmem>>, vector<1x8xf32>
    %139 = vector.broadcast %138 : vector<1x8xf32> to vector<32x8xf32>
    %140 = arith.addf %137, %139 : vector<32x8xf32>
    %141 = tpu.concatenate %57, %140 in 1 : vector<32x24xf32>, vector<32x8xf32> -> vector<32x32xf32>
    %c0_44 = arith.constant 0 : index
    %c0_45 = arith.constant 0 : index
    %142 = vector.load %arg11[%c0_44, %c0_45] : memref<32x16xf32, #tpu.memory_space<vmem>>, vector<32x16xf32>
    %cst_46 = arith.constant dense<0.000000e+00> : vector<32x16xf32>
    %143 = tpu.matmul %141, %142, %cst_46 {dimension_numbers = #tpu.dot_dimension_numbers<[1], [0], [0], [1], [0, 0, 1, 1], [], []>} : vector<32x32xf32>, vector<32x16xf32>, vector<32x16xf32> -> vector<32x16xf32>
    %c0_47 = arith.constant 0 : index
    %c0_48 = arith.constant 0 : index
    %144 = vector.load %arg12[%c0_47, %c0_48] : memref<1x16xf32, #tpu.memory_space<vmem>>, vector<1x16xf32>
    %145 = vector.broadcast %144 : vector<1x16xf32> to vector<32x16xf32>
    %146 = arith.addf %143, %145 : vector<32x16xf32>
    %cst_49 = arith.constant 0.000000e+00 : f32
    %147 = vector.broadcast %cst_49 : f32 to vector<32x16xf32>
    %148 = arith.maximumf %146, %147 : vector<32x16xf32>
    %c0_50 = arith.constant 0 : index
    %c0_51 = arith.constant 0 : index
    %149 = vector.load %arg13[%c0_50, %c0_51] : memref<16x32xf32, #tpu.memory_space<vmem>>, vector<16x32xf32>
    %cst_52 = arith.constant dense<0.000000e+00> : vector<32x32xf32>
    %150 = tpu.matmul %148, %149, %cst_52 {dimension_numbers = #tpu.dot_dimension_numbers<[1], [0], [0], [1], [0, 0, 1, 1], [], []>} : vector<32x16xf32>, vector<16x32xf32>, vector<32x32xf32> -> vector<32x32xf32>
    %c0_53 = arith.constant 0 : index
    %c0_54 = arith.constant 0 : index
    %151 = vector.load %arg14[%c0_53, %c0_54] : memref<1x32xf32, #tpu.memory_space<vmem>>, vector<1x32xf32>
    %152 = vector.broadcast %151 : vector<1x32xf32> to vector<32x32xf32>
    %153 = arith.addf %150, %152 : vector<32x32xf32>
    %cst_55 = arith.constant dense<0xFF800000> : vector<32xf32>
    %154 = vector.multi_reduction <maximumf>, %153, %cst_55 [1] : vector<32x32xf32> to vector<32xf32>
    %155 = vector.shape_cast %154 : vector<32xf32> to vector<32x1xf32>
    %156 = vector.broadcast %155 : vector<32x1xf32> to vector<32x32xf32>
    %157 = arith.subf %153, %156 : vector<32x32xf32>
    %158 = math.exp %157 : vector<32x32xf32>
    %cst_56 = arith.constant dense<0.000000e+00> : vector<32xf32>
    %159 = vector.multi_reduction <add>, %158, %cst_56 [1] : vector<32x32xf32> to vector<32xf32>
    %160 = vector.shape_cast %159 : vector<32xf32> to vector<32x1xf32>
    %161 = tpu.reciprocal %160 {approx = true} : vector<32x1xf32> -> vector<32x1xf32>
    %162 = vector.broadcast %161 : vector<32x1xf32> to vector<32x32xf32>
    %163 = arith.mulf %158, %162 : vector<32x32xf32>
    %164 = arith.mulf %163, %141 : vector<32x32xf32>
    %c0_57 = arith.constant 0 : index
    %c0_58 = arith.constant 0 : index
    %165 = vector.load %arg15[%c0_57, %c0_58] : memref<32x32xf32, #tpu.memory_space<vmem>>, vector<32x32xf32>
    %cst_59 = arith.constant dense<0.000000e+00> : vector<32x32xf32>
    %166 = tpu.matmul %164, %165, %cst_59 {dimension_numbers = #tpu.dot_dimension_numbers<[1], [0], [0], [1], [0, 0, 1, 1], [], []>} : vector<32x32xf32>, vector<32x32xf32>, vector<32x32xf32> -> vector<32x32xf32>
    %c0_60 = arith.constant 0 : index
    %c0_61 = arith.constant 0 : index
    %167 = vector.load %arg16[%c0_60, %c0_61] : memref<1x32xf32, #tpu.memory_space<vmem>>, vector<1x32xf32>
    %168 = vector.broadcast %167 : vector<1x32xf32> to vector<32x32xf32>
    %169 = arith.addf %166, %168 : vector<32x32xf32>
    %c0_62 = arith.constant 0 : index
    %c0_63 = arith.constant 0 : index
    %170 = vector.load %arg17[%c0_62, %c0_63] : memref<32x32xf32, #tpu.memory_space<vmem>>, vector<32x32xf32>
    tpu.vector_store %arg17[%c0_62, %c0_63], %169 {strides = array<i32>} : memref<32x32xf32, #tpu.memory_space<vmem>>, vector<32x32xf32>,
    return
  }
  func.func @transform_0(%arg0: i32) -> (i32, i32) {
    %c0_i32 = arith.constant 0 : i32
    %c0_i32_0 = arith.constant 0 : i32
    return %arg0, %c0_i32 : i32, i32
  }
  func.func @transform_1(%arg0: i32) -> (i32, i32) {
    %c0_i32 = arith.constant 0 : i32
    %c0_i32_0 = arith.constant 0 : i32
    %c0_i32_1 = arith.constant 0 : i32
    return %c0_i32, %c0_i32_0 : i32, i32
  }
  func.func @transform_2(%arg0: i32) -> (i32, i32) {
    %c0_i32 = arith.constant 0 : i32
    %c0_i32_0 = arith.constant 0 : i32
    %c0_i32_1 = arith.constant 0 : i32
    return %c0_i32, %c0_i32_0 : i32, i32
  }
  func.func @transform_3(%arg0: i32) -> (i32, i32) {
    %c0_i32 = arith.constant 0 : i32
    %c0_i32_0 = arith.constant 0 : i32
    %c0_i32_1 = arith.constant 0 : i32
    return %c0_i32, %c0_i32_0 : i32, i32
  }
  func.func @transform_4(%arg0: i32) -> (i32, i32) {
    %c0_i32 = arith.constant 0 : i32
    %c0_i32_0 = arith.constant 0 : i32
    %c0_i32_1 = arith.constant 0 : i32
    return %c0_i32, %c0_i32_0 : i32, i32
  }
  func.func @transform_5(%arg0: i32) -> (i32, i32) {
    %c0_i32 = arith.constant 0 : i32
    %c0_i32_0 = arith.constant 0 : i32
    %c0_i32_1 = arith.constant 0 : i32
    return %c0_i32, %c0_i32_0 : i32, i32
  }
  func.func @transform_6(%arg0: i32) -> (i32, i32) {
    %c0_i32 = arith.constant 0 : i32
    %c0_i32_0 = arith.constant 0 : i32
    %c0_i32_1 = arith.constant 0 : i32
    return %c0_i32, %c0_i32_0 : i32, i32
  }
  func.func @transform_7(%arg0: i32) -> (i32, i32) {
    %c0_i32 = arith.constant 0 : i32
    %c0_i32_0 = arith.constant 0 : i32
    %c0_i32_1 = arith.constant 0 : i32
    return %c0_i32, %c0_i32_0 : i32, i32
  }
  func.func @transform_8(%arg0: i32) -> (i32, i32) {
    %c0_i32 = arith.constant 0 : i32
    %c0_i32_0 = arith.constant 0 : i32
    %c0_i32_1 = arith.constant 0 : i32
    return %c0_i32, %c0_i32_0 : i32, i32
  }
  func.func @transform_9(%arg0: i32) -> (i32, i32) {
    %c0_i32 = arith.constant 0 : i32
    %c0_i32_0 = arith.constant 0 : i32
    %c0_i32_1 = arith.constant 0 : i32
    return %c0_i32, %c0_i32_0 : i32, i32
  }
  func.func @transform_10(%arg0: i32) -> (i32, i32) {
    %c0_i32 = arith.constant 0 : i32
    %c0_i32_0 = arith.constant 0 : i32
    %c0_i32_1 = arith.constant 0 : i32
    return %c0_i32, %c0_i32_0 : i32, i32
  }
  func.func @transform_11(%arg0: i32) -> (i32, i32) {
    %c0_i32 = arith.constant 0 : i32
    %c0_i32_0 = arith.constant 0 : i32
    %c0_i32_1 = arith.constant 0 : i32
    return %c0_i32, %c0_i32_0 : i32, i32
  }
  func.func @transform_12(%arg0: i32) -> (i32, i32) {
    %c0_i32 = arith.constant 0 : i32
    %c0_i32_0 = arith.constant 0 : i32
    %c0_i32_1 = arith.constant 0 : i32
    return %c0_i32, %c0_i32_0 : i32, i32
  }
  func.func @transform_13(%arg0: i32) -> (i32, i32) {
    %c0_i32 = arith.constant 0 : i32
    %c0_i32_0 = arith.constant 0 : i32
    %c0_i32_1 = arith.constant 0 : i32
    return %c0_i32, %c0_i32_0 : i32, i32
  }
  func.func @transform_14(%arg0: i32) -> (i32, i32) {
    %c0_i32 = arith.constant 0 : i32
    %c0_i32_0 = arith.constant 0 : i32
    %c0_i32_1 = arith.constant 0 : i32
    return %c0_i32, %c0_i32_0 : i32, i32
  }
  func.func @transform_15(%arg0: i32) -> (i32, i32) {
    %c0_i32 = arith.constant 0 : i32
    %c0_i32_0 = arith.constant 0 : i32
    %c0_i32_1 = arith.constant 0 : i32
    return %c0_i32, %c0_i32_0 : i32, i32
  }
  func.func @transform_16(%arg0: i32) -> (i32, i32) {
    %c0_i32 = arith.constant 0 : i32
    %c0_i32_0 = arith.constant 0 : i32
    return %arg0, %c0_i32 : i32, i32
  }
}

</mosaic_0001>

<bundles_post_ra>
// kernel: _lambda_.1
= control target key start
LH: loop header
LB: loop body
LE: loop exit
PB: predicated region body
PF: predicated region fallthrough
CT: control target
= control target key end

     0   :  { %s5006_s0 = inlined_call_operand.vmem [shape: f32[64,32], index: 0, kind: input, shape index: {}]   ;;  %s5007_s1 = inlined_call_operand.hbm [shape: f32[24,72], index: 1, kind: input, shape index: {}]   ;;  %s5008_s2 = inlined_call_operand.vmem [shape: f32[1,72], index: 2, kind: input, shape index: {}]   ;;  %s5009_s3 = inlined_call_operand.vmem [shape: f32[8,16], index: 3, kind: input, shape index: {}]   ;;  %s5010_s4 = inlined_call_operand.vmem [shape: f32[1,16], index: 4, kind: input, shape index: {}]   ;;  %s5011_s5 = inlined_call_operand.hbm [shape: f32[8,6], index: 5, kind: input, shape index: {}]   ;;  %s5012_s6 = inlined_call_operand.vmem [shape: f32[1,6], index: 6, kind: input, shape index: {}]   ;;  %s5013_s7 = inlined_call_operand.hbm [shape: f32[8,8], index: 7, kind: input, shape index: {}]   ;;  %s5014_s8 = inlined_call_operand.vmem [shape: f32[1,8], index: 8, kind: input, shape index: {}]   ;;  %s5015_s9 = inlined_call_operand.hbm [shape: f32[1,8], index: 9, kind: input, shape index: {}]   ;;  %s5016_s10 = inlined_call_operand.vmem [shape: f32[32,16], index: 10, kind: input, shape index: {}]   ;;  %s5017_s11 = inlined_call_operand.hbm [shape: f32[1,16], index: 11, kind: input, shape index: {}]   ;;  %s5018_s12 = inlined_call_operand.hbm [shape: f32[16,32], index: 12, kind: input, shape index: {}]   ;;  %s5019_s13 = inlined_call_operand.hbm [shape: f32[1,32], index: 13, kind: input, shape index: {}]   ;;  %s5020_s14 = inlined_call_operand.vmem [shape: f32[32,32], index: 14, kind: input, shape index: {}]   ;;  %s5021_s15 = inlined_call_operand.hbm [shape: f32[1,32], index: 15, kind: input, shape index: {}]   ;;  %s5022_s16 = inlined_call_operand.hbm [shape: f32[64,32], index: 16, kind: output, shape index: {}]  }
   0x1   :  { %5037 = sst [smem:[#allocation31_spill]] %s5006_s0 }
   0x2   :  { %5038 = sst [smem:[#allocation32_spill]] %s5011_s5 }
   0x3   :  { %5039 = sst [smem:[#allocation33_spill]] %s5014_s8 }
   0x4   :  { %5040 = sst [smem:[#allocation34_spill]] %s5015_s9 }
   0x5   :  { %5041 = sst [smem:[#allocation35_spill]] %s5020_s14 }
   0x6   :  { %5042 = sst [smem:[#allocation36_spill]] %s5022_s16 }
   0x7   :  { %21 = vsyncpa [#allocation3], 0 }
   0x8   :  { %22 = vsyncpa [#allocation6], 0 }
   0x9   :  { %23 = vsyncpa [#allocation9], 0 }
   0xa   :  { %24 = vsyncpa [#allocation12], 0 }
   0xb   :  { %25 = vsyncpa [#allocation15], 0 }
   0xc   :  { %26 = vsyncpa [#allocation4], 0 }
   0xd   :  { %28 = vsyncpa [#allocation4 + $0x1], 0  ;;  %s4268_s21 = smov 0   ;;  %s4270_s22 = smov 0  }
   0xe   :  { %s4272_s23 = smov 0   ;;  %s4274_s24 = smov 0  }
   0xf LB: > { %5043 = sst [smem:[#allocation23_spill]] %s4143_s21  ;;  %s4289_s25 = sadd.s32 4294967295, %s4155_s24   ;;  %s4155_s24 = sphi %s4274_s24, %s5085_s24   ;;  %s4151_s23 = sphi %s4272_s23, %s5088_s23   ;;  %s4147_s22 = sphi %s4270_s22, %s5087_s22   ;;  %s4143_s21 = sphi %s4268_s21, %s5086_s21  }
  0x10   : > { %5044 = sst [smem:[#allocation24_spill]] %s4147_s22  ;;  %s3254_s26 = sadd.s32 4294967294, %s4155_s24  }
  0x11   : > { %5045 = sst [smem:[#allocation25_spill]] %s4151_s23  ;;  %s4293_s27 = sadd.s32 1, %s4155_s24  }
  0x12   : > { %5046 = sst [smem:[#allocation26_spill]] %s4155_s24  ;;  %s382_s28 = sadd.s32 1, %s4151_s23 }
  0x13   : > { %5047 = sst [smem:[#allocation27_spill]] %s4293_s27  ;;  %s379_s29 = ssub.s32 %s4155_s24, %s4293_s27 }
  0x14   : > { %p392_p0 = scmp.ne.s32.totalorder %s4151_s23, %s4147_s22  ;;  %p380_p1 = scmp.eq.s32.totalorder %s379_s29, 0 }
  0x15   : > { %p393_p2 = scmp.eq.s32.totalorder %s4289_s25, 1  ;;  %p398_p3 = scmp.ne.s32.totalorder %s4147_s22, %s4143_s21 }
  0x16   : > { %p399_p4 = scmp.eq.s32.totalorder %s3254_s26, 1  ;;  %p3255_p7 = scmp.ge.s32.totalorder %s4155_s24, 1 }
  0x17   : > { %s4304_s30 = scalar_select %p380_p1, %s4151_s23, %s382_s28  }
  0x18   : > { %p4306_p5 = por %p393_p2, %p392_p0  ;;  %p4310_p6 = por %p399_p4, %p398_p3 }
  0x19   : > { %5048 = sst [smem:[#allocation28_spill]] %s4304_s30  ;;  %p406_p8 = scmp.lt.s32.totalorder %s4155_s24, 3 }
  0x1a   : > { %s5049_s0 = scalar_select %p4306_p5, 1, 0 }
  0x1b   : > { %s5051_s17 = scalar_select %p4310_p6, 1, 0 }
  0x1c   : > { %5050 = sst [smem:[#allocation29_spill]] %s5049_s0  ;;  %p5030_p9 = scmp.eq.s32.totalorder %s4289_s25, 0 }
  0x1d   : > { %5052 = sst [smem:[#allocation30_spill]] %s5051_s17  ;;  %p4317_p10 = pnand %p3255_p7, %p406_p8 }
  0x1e   : > { %s4157_s19 = smov [#allocation5]   ;;  %s4158_s26 = smov [#allocation8]  }
  0x1f   : > { %s5053_s18 = scalar_select %p4317_p10, 1, 0 }
  0x20   : > { %s441_s20 = sshll.u32 %s4157_s19, 4  ;;  %p3636_p11 = pneg %p4317_p10  ;;  %s442_s20 = int_to_ptr.vmem [resolvable:$true] %s441_s20 }
  0x21   : > { %s469_s28 = sshll.u32 %s4158_s26, 4  ;;  %s4159_s30 = smov [#allocation11]   ;;  %s4329_s28 = int_to_ptr.vmem [resolvable:$true] %s469_s28 }
  0x22   : > { %p4325_p12 = pnand %p5030_p9, %p3636_p11  ;;  %s4331_s23 = sshll.u32 %s4159_s30, 4  ;;  %s494_s23 = int_to_ptr.vmem [resolvable:$true] %s4331_s23 }
  0x23   : > { %s5055_s5 = sld [smem:[#allocation32_spill]] }
  0x24   : > { %p4341_p0 = pneg %p4325_p12 }
  0x29   : > { %s3849_s19 = scalar_lea.hbm %s5055_s5, 128 }
  0x2a   : > { %p3850_p13 = scmp.ne.s32.totalorder %s5055_s5, %s3849_s19  ;;  %p3856_p3 = scmp.lt.u32.totalorder %s3849_s19, %s5055_s5 }
  0x2c   : > { %p3852_p1 = pnand %p4341_p0, %p3850_p13 }
  0x2e   : > { %p3853_p2 = pneg %p3852_p1 }
  0x30   : > { %p3858_p4 = pnand %p3856_p3, %p3853_p2 }
  0x32   : > { %3861 = shalt.err (!%p3858_p4)
}
  0x33   : > { %s3862_s27 = scalar_lea.vmem %s442_s20, 128  ;;  %p3870_p9 = scmp.lt.s32.totalorder %s442_s20, %s442_s20 }
  0x34   : > { %p3863_p7 = scmp.ne.s32.totalorder %s442_s20, %s3862_s27  ;;  %p3871_p6 = scmp.lt.s32.totalorder %s3862_s27, %s3862_s27 }
  0x36   : > { %p3865_p8 = pnand %p3863_p7, %p4341_p0  ;;  %p3872_p5 = por %p3871_p6, %p3870_p9 }
  0x38   : > { %p3866_p11 = pneg %p3865_p8 }
  0x3a   : > { %p3873_p10 = pnand %p3872_p5, %p3866_p11 }
  0x3c   : > { %3876 = shalt.err (!%p3873_p10)
}
  0x3d   : > { %3642 = dma.hbm_to_vmem [thread:$0]  (!%p4325_p12), %s5055_s5, 128, %s442_s20, [#allocation6]  }
  0x3e   : > { %s5057_s9 = sld [smem:[#allocation34_spill]] }
  0x44   : > { %s3877_s19 = scalar_lea.hbm %s5057_s9, 16 }
  0x45   : > { %p3878_p13 = scmp.ne.s32.totalorder %s5057_s9, %s3877_s19  ;;  %p3884_p5 = scmp.lt.u32.totalorder %s3877_s19, %s5057_s9 }
  0x47   : > { %p3880_p1 = pnand %p3878_p13, %p4341_p0 }
  0x49   : > { %p3881_p6 = pneg %p3880_p1 }
  0x4b   : > { %p3886_p9 = pnand %p3884_p5, %p3881_p6 }
  0x4d   : > { %3889 = shalt.err (!%p3886_p9)
}
  0x4e   : > { %s3890_s20 = scalar_lea.vmem %s4329_s28, 16  ;;  %s3897_s0 = scalar_lea.vmem %s4329_s28, 32 }
  0x4f   : > { %p3891_p10 = scmp.ne.s32.totalorder %s4329_s28, %s3890_s20  ;;  %p3898_p4 = scmp.lt.s32.totalorder %s4329_s28, %s4329_s28 }
  0x50   : > { %p3899_p7 = scmp.lt.s32.totalorder %s3897_s0, %s3890_s20 }
  0x51   : > { %p3893_p2 = pnand %p3891_p10, %p4341_p0 }
  0x52   : > { %p3900_p8 = por %p3899_p7, %p3898_p4 }
  0x53   : > { %p3894_p3 = pneg %p3893_p2 }
  0x55   : > { %p3901_p11 = pnand %p3900_p8, %p3894_p3 }
  0x57   : > { %3904 = shalt.err (!%p3901_p11)
}
  0x58   : > { %3648 = dma.hbm_to_vmem [thread:$0]  (!%p4325_p12), %s5057_s9, 16, %s4329_s28, [#allocation9]  }
  0x59   : > { %s3905_s17 = scalar_lea.hbm %s5018_s12, 256 }
  0x5a   : > { %p3906_p13 = scmp.ne.s32.totalorder %s5018_s12, %s3905_s17  ;;  %p3912_p5 = scmp.lt.u32.totalorder %s3905_s17, %s5018_s12 }
  0x5c   : > { %p3908_p1 = pnand %p3906_p13, %p4341_p0 }
  0x5e   : > { %p3909_p6 = pneg %p3908_p1 }
  0x60   : > { %p3914_p9 = pnand %p3912_p5, %p3909_p6 }
  0x62   : > { %3917 = shalt.err (!%p3914_p9)
}
  0x63   : > { %s3918_s0 = scalar_lea.vmem %s494_s23, 256  ;;  %p3926_p4 = scmp.lt.s32.totalorder %s494_s23, %s494_s23 }
  0x64   : > { %p3919_p10 = scmp.ne.s32.totalorder %s494_s23, %s3918_s0  ;;  %p3927_p7 = scmp.lt.s32.totalorder %s3918_s0, %s3918_s0 }
  0x66   : > { %p3921_p2 = pnand %p3919_p10, %p4341_p0  ;;  %p3928_p8 = por %p3927_p7, %p3926_p4 }
  0x68   : > { %p3922_p3 = pneg %p3921_p2 }
  0x6a   : > { %p3929_p11 = pnand %p3928_p8, %p3922_p3 }
  0x6c   : > { %3932 = shalt.err (!%p3929_p11)
}
  0x6d   : > { %s4160_s28 = smov 128   ;;  %s4161_s22 = smov 8  }
  0x6e   : > { %3654 = dma.hbm_to_vmem [thread:$0]  (!%p4325_p12), %s5018_s12, 256, %s494_s23, [#allocation12], %s4160_s28, %s4160_s28, %s4161_s22  }
  0x6f   : > { %s4162_s16 = smov [#allocation2]   ;;  %s4163_s19 = smov [#allocation7]  }
  0x70   : > { %s418_s17 = sshll.u32 %s4162_s16, 4  ;;  %s455_s30 = sshll.u32 %s4163_s19, 4  ;;  %s419_s17 = int_to_ptr.vmem [resolvable:$true] %s418_s17  ;;  %s456_s30 = int_to_ptr.vmem [resolvable:$true] %s455_s30 }
  0x71   : > { %s3933_s0 = scalar_lea.hbm %s5007_s1, 384 }
  0x72   : > { %p3934_p13 = scmp.ne.s32.totalorder %s5007_s1, %s3933_s0  ;;  %p3940_p5 = scmp.lt.u32.totalorder %s3933_s0, %s5007_s1 }
  0x74   : > { %p3936_p1 = pnand %p3934_p13, %p4341_p0 }
  0x76   : > { %p3937_p6 = pneg %p3936_p1 }
  0x78   : > { %p3942_p9 = pnand %p3940_p5, %p3937_p6 }
  0x7a   : > { %3945 = shalt.err (!%p3942_p9)
}
  0x7b   : > { %s3946_s23 = scalar_lea.vmem %s419_s17, 384  ;;  %p3954_p4 = scmp.lt.s32.totalorder %s419_s17, %s419_s17 }
  0x7c   : > { %p3947_p10 = scmp.ne.s32.totalorder %s419_s17, %s3946_s23  ;;  %p3955_p7 = scmp.lt.s32.totalorder %s3946_s23, %s3946_s23 }
  0x7e   : > { %p3949_p2 = pnand %p3947_p10, %p4341_p0  ;;  %p3956_p8 = por %p3955_p7, %p3954_p4 }
  0x80   : > { %p3950_p3 = pneg %p3949_p2 }
  0x82   : > { %p3957_p11 = pnand %p3956_p8, %p3950_p3 }
  0x84   : > { %3960 = shalt.err (!%p3957_p11)
}
  0x85   : > { %3639 = dma.hbm_to_vmem [thread:$0]  (!%p4325_p12), %s5007_s1, 384, %s419_s17, [#allocation3], %s4160_s28, %s4160_s28, %s4161_s22  }
  0x86   : > { %s3961_s21 = scalar_lea.hbm %s5013_s7, 128 }
  0x87   : > { %p3962_p13 = scmp.ne.s32.totalorder %s5013_s7, %s3961_s21  ;;  %p3968_p5 = scmp.lt.u32.totalorder %s3961_s21, %s5013_s7 }
  0x89   : > { %p3964_p1 = pnand %p3962_p13, %p4341_p0 }
  0x8b   : > { %p3965_p6 = pneg %p3964_p1 }
  0x8d   : > { %p3970_p9 = pnand %p3968_p5, %p3965_p6 }
  0x8f   : > { %3973 = shalt.err (!%p3970_p9)
}
  0x90   : > { %s3974_s20 = scalar_lea.vmem %s456_s30, 128  ;;  %p3982_p4 = scmp.lt.s32.totalorder %s456_s30, %s456_s30 }
  0x91   : > { %p3975_p10 = scmp.ne.s32.totalorder %s456_s30, %s3974_s20  ;;  %p3983_p7 = scmp.lt.s32.totalorder %s3974_s20, %s3974_s20 }
  0x93   : > { %p3977_p2 = pnand %p3975_p10, %p4341_p0  ;;  %p3984_p8 = por %p3983_p7, %p3982_p4 }
  0x95   : > { %p3978_p3 = pneg %p3977_p2 }
  0x97   : > { %p3985_p11 = pnand %p3984_p8, %p3978_p3 }
  0x99   : > { %3988 = shalt.err (!%p3985_p11)
}
  0x9a   : > { %3645 = dma.hbm_to_vmem [thread:$0]  (!%p4325_p12), %s5013_s7, 128, %s456_s30, [#allocation6]  }
  0x9b   : > { %s4164_s17 = smov [#allocation10]   ;;  %s4165_s23 = smov [#allocation13]  }
  0x9c   : > { %s483_s0 = sshll.u32 %s4164_s17, 4  ;;  %s507_s5 = sshll.u32 %s4165_s23, 4  ;;  %s484_s0 = int_to_ptr.vmem [resolvable:$true] %s483_s0  ;;  %s508_s5 = int_to_ptr.vmem [resolvable:$true] %s507_s5 }
  0x9d   : > { %s3989_s14 = scalar_lea.hbm %s5017_s11, 16 }
  0x9e   : > { %p3990_p13 = scmp.ne.s32.totalorder %s5017_s11, %s3989_s14  ;;  %p3996_p5 = scmp.lt.u32.totalorder %s3989_s14, %s5017_s11 }
  0xa0   : > { %p3992_p1 = pnand %p3990_p13, %p4341_p0 }
  0xa2   : > { %p3993_p6 = pneg %p3992_p1 }
  0xa4   : > { %p3998_p9 = pnand %p3996_p5, %p3993_p6 }
  0xa6   : > { %4001 = shalt.err (!%p3998_p9)
}
  0xa7   : > { %s4002_s30 = scalar_lea.vmem %s484_s0, 16  ;;  %s4009_s27 = scalar_lea.vmem %s484_s0, 32 }
  0xa8   : > { %p4003_p10 = scmp.ne.s32.totalorder %s484_s0, %s4002_s30  ;;  %p4010_p4 = scmp.lt.s32.totalorder %s484_s0, %s484_s0 }
  0xa9   : > { %p4011_p7 = scmp.lt.s32.totalorder %s4009_s27, %s4002_s30 }
  0xaa   : > { %p4005_p2 = pnand %p4003_p10, %p4341_p0 }
  0xab   : > { %p4012_p8 = por %p4011_p7, %p4010_p4 }
  0xac   : > { %p4006_p3 = pneg %p4005_p2 }
  0xae   : > { %p4013_p11 = pnand %p4012_p8, %p4006_p3 }
  0xb0   : > { %4016 = shalt.err (!%p4013_p11)
}
  0xb1   : > { %3651 = dma.hbm_to_vmem [thread:$0]  (!%p4325_p12), %s5017_s11, 16, %s484_s0, [#allocation9]  }
  0xb2   : > { %s4017_s23 = scalar_lea.hbm %s5019_s13, 16 }
  0xb3   : > { %p4018_p13 = scmp.ne.s32.totalorder %s5019_s13, %s4017_s23  ;;  %p4024_p5 = scmp.lt.u32.totalorder %s4017_s23, %s5019_s13 }
  0xb5   : > { %p4020_p1 = pnand %p4018_p13, %p4341_p0 }
  0xb7   : > { %p4021_p6 = pneg %p4020_p1 }
  0xb9   : > { %p4026_p9 = pnand %p4024_p5, %p4021_p6 }
  0xbb   : > { %4029 = shalt.err (!%p4026_p9)
}
  0xbc   : > { %s4030_s24 = scalar_lea.vmem %s508_s5, 16  ;;  %s4037_s0 = scalar_lea.vmem %s508_s5, 32 }
  0xbd   : > { %p4031_p10 = scmp.ne.s32.totalorder %s508_s5, %s4030_s24  ;;  %p4038_p4 = scmp.lt.s32.totalorder %s508_s5, %s508_s5 }
  0xbe   : > { %p4039_p7 = scmp.lt.s32.totalorder %s4037_s0, %s4030_s24 }
  0xbf   : > { %p4033_p2 = pnand %p4031_p10, %p4341_p0 }
  0xc0   : > { %p4040_p8 = por %p4039_p7, %p4038_p4 }
  0xc1   : > { %p4034_p3 = pneg %p4033_p2 }
  0xc3   : > { %p4041_p11 = pnand %p4040_p8, %p4034_p3 }
  0xc5   : > { %4044 = shalt.err (!%p4041_p11)
}
  0xc6   : > { %3657 = dma.hbm_to_vmem [thread:$0]  (!%p4325_p12), %s5019_s13, 16, %s508_s5, [#allocation12]  }
  0xc7   : > { %s4166_s30 = smov [#allocation14]   ;;  %s4045_s22 = scalar_lea.hbm %s5021_s15, 16 }
  0xc8   : > { %s521_s27 = sshll.u32 %s4166_s30, 4  ;;  %p4046_p13 = scmp.ne.s32.totalorder %s5021_s15, %s4045_s22  ;;  %s522_s27 = int_to_ptr.vmem [resolvable:$true] %s521_s27 }
  0xc9   : > { %p4052_p5 = scmp.lt.u32.totalorder %s4045_s22, %s5021_s15 }
  0xca   : > { %p4048_p1 = pnand %p4046_p13, %p4341_p0 }
  0xcc   : > { %p4049_p6 = pneg %p4048_p1 }
  0xce   : > { %p4054_p9 = pnand %p4052_p5, %p4049_p6 }
  0xd0   : > { %4057 = shalt.err (!%p4054_p9)
}
  0xd1   : > { %s4058_s5 = scalar_lea.vmem %s522_s27, 16  ;;  %s4065_s14 = scalar_lea.vmem %s522_s27, 32 }
  0xd2   : > { %p4059_p10 = scmp.ne.s32.totalorder %s522_s27, %s4058_s5  ;;  %p4066_p4 = scmp.lt.s32.totalorder %s522_s27, %s522_s27 }
  0xd3   : > { %p4067_p7 = scmp.lt.s32.totalorder %s4065_s14, %s4058_s5 }
  0xd4   : > { %p4061_p2 = pnand %p4059_p10, %p4341_p0 }
  0xd5   : > { %p4068_p8 = por %p4067_p7, %p4066_p4 }
  0xd6   : > { %p4062_p3 = pneg %p4061_p2 }
  0xd8   : > { %p4069_p11 = pnand %p4068_p8, %p4062_p3 }
  0xda   : > { %4072 = shalt.err (!%p4069_p11)
}
  0xdb   : > { %3660 = dma.hbm_to_vmem [thread:$0]  (!%p4325_p12), %s5021_s15, 16, %s522_s27, [#allocation15]  }
  0xdc   : > { %p5058_p13 = scmp.ne.s32.totalorder %s5053_s18, 0 }
  0xdd   : > { %p5059_p1 = scmp.eq.s32.totalorder (!%p5058_p13), %s4289_s25, 0 }
  0xde   : > { %543 = sbr.rel (%p5058_p13) target bundleno = 3850 (0xf0a), region = 84 }
  0xe5   : > { %4118 = dma.done.wait (%p5059_p1), [#allocation3], 384   ;;  %p5060_p0 = pmov %p5059_p1 }
  0xe7   : > { %4120 = vsyncadd (%p5060_p0), [#allocation3], 4294966912  ;;  %p5061_p6 = pmov %p5060_p0 }
  0xe8   : > { %p5062_p5 = pmov %p5060_p0 }
  0xe9   : > { %4122 = dma.done.wait (%p5061_p6), [#allocation6], 256  }
  0xea   : > { %4124 = vsyncadd (%p5062_p5), [#allocation6], 4294967040  ;;  %p5063_p9 = pmov %p5060_p0 }
  0xeb   : > { %p5064_p12 = pmov %p5060_p0 }
  0xec   : > { %4126 = dma.done.wait (%p5063_p9), [#allocation9], 32  }
  0xed   : > { %4128 = vsyncadd (%p5064_p12), [#allocation9], 4294967264  ;;  %p5065_p10 = pmov %p5060_p0 }
  0xee   : > { %p5066_p2 = pmov %p5060_p0 }
  0xef   : > { %4130 = dma.done.wait (%p5065_p10), [#allocation12], 272  }
  0xf0   : > { %4132 = vsyncadd (%p5066_p2), [#allocation12], 4294967024  ;;  %p5067_p3 = pmov %p5060_p0 }
  0xf1   : > { %p5068_p4 = pmov %p5060_p0 }
  0xf2   : > { %4134 = dma.done.wait (%p5067_p3), [#allocation15], 16  }
  0xf3   : > { %4136 = vsyncadd (%p5068_p4), [#allocation15], 4294967280  ;;  %s3275_s18 = sshll.u32 %s4289_s25, 2  ;;  %s5069_s16 = sld [smem:[#allocation31_spill]]  ;;  %vm642_vm0 = vcmask 195584   ;;  %v632_v0 = vld [vmem:[#allocation2] sm:$0xff]  ;;  %v740_v22 = vlaneseq }
  0xf4   : > { %p622_p7 = scmp.lt.s32.totalorder %s3275_s18, 7  ;;  %v633_v1 = vld [vmem:[#allocation2 + $0x8] sm:$0xff]  ;;  %v634_v4 = vld [vmem:[#allocation2 + $0x10] sm:$0xff]  ;;  %v4167_v8 = vmov 0.0   ;;  %vm4168_vm1 = vmmov 0   ;;  %s4169_s20 = smov 104  }
  0xf5   : > { %v3578_v2 = vpack.c.bf16 %v633_v1, %v632_v0  ;;  %3436 = vmatprep.subr.mxu1 %v4167_v8  ;;  %3438 = vmatprep.mubr.msk.f32.mxu1 %vm4168_vm1, %v4167_v8  ;;  %v3277_v9 = vld [vmem:[%s5008_s2] ss:$0 sm:$0xff]  ;;  %s4170_s28 = smov 80   ;;  %vm748_vm2 = vcmask 97280   ;;  %v4578_v23 = vshrl.u32 %v740_v22, 7  ;;  %v4580_v24 = vand.u32 127, %v740_v22 }
  0xf6   : > { %s5090_s18 = smov (!%p622_p7, %s3275_s18), 7  ;;  %vm1064_vm4 = vcmask 64512   ;;  %s4171_s22 = smov 116   ;;  %vm2368_vm8 = vcmask 23552   ;;  %vm2526_vm9 = vcmask 31744   ;;  %vm2730_vm11 = vcmask 261120  }
  0xf7   : > { %s3276_s29 = sshll.u32 %s5090_s18, 3  ;;  %3579 = vmatprep.subr.bf16.mxu0 %v3578_v2  ;;  %vm4584_vm3 = vcmp.le.s32.totalorder %v4580_v24, %v4578_v23  ;;  %s4172_s17 = smov 92   ;;  %vm2359_vm5 = vcmp.le.s32.totalorder %v4580_v24, 1  ;;  %vm2481_vm10 = vcmp.lt.s32.totalorder %v4578_v23, 1  ;;  %vm2841_vm12 = vcmask 130048  }
  0xf8   : > { %3581 = vmatpush3.bf16.msra.mxu0 %v3578_v2  ;;  %s4173_s23 = smov 68   ;;  %s4174_s21 = smov 120  }
  0xf9   : > { %s625_s19 = scalar_lea.vmem %s5069_s16, %s3276_s29  ;;  %3428 = vmatprep.subr.mxu0 %v634_v4  ;;  %s4175_s29 = smov 125  }
  0xfa   : > { %v4516_v3 = vld [vmem:[%s625_s19] sm:$0xff]  ;;  %v4520_v5 = vld [vmem:[%s625_s19 + $0x8] sm:$0xff]  ;;  %v4522_v6 = vld [vmem:[%s625_s19 + $0x10] sm:$0xff]  ;;  %s4178_s26 = smov 12   ;;  %s5074_s9 = sld [smem:[#allocation33_spill]] }
  0xfb   : > { %3430 = vmatprep.mubr.msk.f32.mxu0 %vm642_vm0, %v4516_v3  ;;  %v4528_v7 = vld [vmem:[%s625_s19 + $0x18] sm:$0xff]  ;;  %s4179_s8 = smov 24   ;;  %s5077_s30 = sld [smem:[#allocation24_spill]] }
  0xfc   : > { %3429 = vmatpush3.msra.mxu0 %v634_v4  ;;  %s5079_s5 = sld [smem:[#allocation36_spill]]  ;;  %s4180_s24 = smov [#allocation16]  }
  0xfd   : > { %3431 = vmatmul.mubr.msk.f32.vlgmr.msra.gmra.mrb[0].mxu0 %vm642_vm0, %v4520_v5  ;;  %3451 = vmatprep.subr.mxu0 %v4167_v8 }
  0xfe   : > { %3433 = vmatprep.mubr.msk.f32.mxu0 %vm642_vm0, %v4522_v6 }
 0x101   : > { %3434 = vmatmul.mubr.msk.f32.gmra.mrb[2].mxu0 %vm642_vm0, %v4528_v7  ;;  %s618_s27 = sand.u32 1, %s5077_s30  }
 0x102   : > { %3453 = vmatprep.mubr.msk.f32.mxu0 %vm4168_vm1, %v4167_v8 }
 0x1d0   : > { %v3432_v10 = vpop.f32.mrb[0].mxu0 }
 0x1d1   : > { %v721_v11 = vpop.f32.mrb[1].mxu0  ;;  %v4547_v16 = vadd.f32 %v3432_v10, %v3277_v9 }
 0x1d2   : > { %v4541_v12 = vadd.f32 %v3277_v9, %v721_v11 }
 0x1d4   : > { %v3435_v13 = vpop.f32.mrb[2].mxu0  ;;  %746 = vrot.lane.b32.xlu0 %v4541_v12, %s4169_s20 }
 0x1d5   : > { %v4545_v14 = vadd.f32 %v3435_v13, %v3277_v9  ;;  %v731_v15 = vpop.f32.mrb[3].mxu0 }
 0x1d6   : > { %v4549_v17 = vadd.f32 %v3277_v9, %v731_v15 }
 0x1d8   : > { %901 = vrot.lane.b32.xlu1 %v4549_v17, %s4169_s20  ;;  %824 = vrot.lane.b32.xlu0 %v4547_v16, %s4169_s20 }
 0x1dc   : > { %1253 = vrot.lane.b32.xlu1 %v4549_v17, %s4170_s28  ;;  %1101 = vrot.lane.b32.xlu0 %v4541_v12, %s4170_s28 }
 0x246   : > { %v747_v18 = vpop.permute.xlu0 %746 }
 0x247   : > { %3437 = vmatpush3.xpose.msk.msra.mxu1 %vm748_vm2, %v747_v18 }
 0x248   : > { %3441 = vmatprep.subr.mxu1 %v4167_v8 }
 0x24a   : > { %3439 = vmatmul.mubr.msk.f32.vlgmr.msra.gmra.mrb[0].mxu1 %vm748_vm2, %v4541_v12  ;;  %v825_v19 = vpop.permute.xlu0 %824  ;;  %v902_v20 = vpop.permute.xlu1 %901 }
 0x24b   : > { %3442 = vmatpush3.xpose.msk.msra.mxu1 %vm748_vm2, %v825_v19  ;;  %3443 = vmatprep.mubr.msk.f32.mxu1 %vm4168_vm1, %v4167_v8 }
 0x24c   : > { %3446 = vmatprep.subr.mxu1 %v4167_v8 }
 0x24e   : > { %3444 = vmatmul.mubr.msk.f32.vlgmr.msra.gmra.mrb[2].mxu1 %vm748_vm2, %v4547_v16  ;;  %v1102_v21 = vpop.permute.xlu0 %1101  ;;  %v1254_v41 = vpop.permute.xlu1 %1253 }
 0x24f   : > { %3447 = vmatpush3.xpose.msk.msra.mxu1 %vm748_vm2, %v902_v20  ;;  %3448 = vmatprep.mubr.msk.f32.mxu1 %vm4168_vm1, %v4167_v8 }
 0x250   : > { %3456 = vmatprep.subr.mxu1 %v4167_v8 }
 0x252   : > { %3449 = vmatmul.mubr.msk.f32.vlgmr.msra.gmra.mrb[4].mxu1 %vm748_vm2, %v4549_v17 }
 0x253   : > { %3457 = vmatpush3.msra.mxu1 %v1102_v21  ;;  %3458 = vmatprep.mubr.msk.f32.mxu1 %vm4168_vm1, %v4167_v8 }
 0x254   : > { %3466 = vmatprep.subr.mxu1 %v4167_v8 }
 0x31d   : > { %v819_v25 = vpop.f32.mrb[0].mxu1 }
 0x31e   : > { %v1054_v27 = vmul.f32 0.28867513, %v819_v25  ;;  %v3440_v28 = vpop.f32.mrb[1].mxu1 }
 0x320   : > { %v1060_v29 = vsel %vm4584_vm3, %v1054_v27, -1e+30 }
 0x321   : > { %v896_v30 = vpop.f32.mrb[2].mxu1  ;;  %v1065_v31 = vsel %vm1064_vm4, %v1060_v29, -inf }
 0x322   : > { %1066 = vmax.xlane.f32.xlu1 %v1065_v31  ;;  %v3445_v32 = vpop.f32.mrb[3].mxu1  ;;  %v1055_v38 = vmul.f32 0.28867513, %v896_v30 }
 0x324   : > { %v4606_v39 = vsel %vm4584_vm3, %v1055_v38, -1e+30  ;;  %v2101_v38 = vld [vmem:[%s5009_s3] sm:$0xff] }
 0x325   : > { %v973_v33 = vpop.f32.mrb[4].mxu1  ;;  %v1068_v40 = vsel %vm1064_vm4, %v4606_v39, -inf }
 0x326   : > { %v1056_v34 = vmul.f32 0.28867513, %v973_v33  ;;  %v3450_v35 = vpop.f32.mrb[5].mxu1 }
 0x328   : > { %v1062_v36 = vsel %vm4584_vm3, %v1056_v34, -1e+30 }
 0x329   : > { %v1071_v37 = vsel %vm1064_vm4, %v1062_v36, -inf }
 0x32a   : > { %1072 = vmax.xlane.f32.xlu0 %v1071_v37 }
 0x333   : > { %978 = vrot.lane.b32.xlu1 %v4545_v14, %s4169_s20 }
 0x337   : > { %1413 = vrot.lane.b32.xlu1 %v4541_v12, %s4171_s22 }
 0x33b   : > { %1569 = vrot.lane.b32.xlu1 %v4549_v17, %s4171_s22 }
 0x340   : > { %1415 = vrot.lane.b32.xlu0 %v4541_v12, %s4172_s17 }
 0x344   : > { %1571 = vrot.lane.b32.xlu0 %v4549_v17, %s4172_s17 }
 0x363   : > { %1069 = vmax.xlane.f32.xlu0 %v1068_v40 }
 0x379   : > { %1329 = vrot.lane.b32.xlu0 %v4545_v14, %s4170_s28 }
 0x37d   : > { %1769 = vrot.lane.b32.xlu0 %v4541_v12, %s4173_s23 }
 0x3af   : > { %v1067_v42 = vpop.xlane.xlu1 %1066 }
 0x3b0   : > { %v1077_v43 = vsub.f32 %v1060_v29, %v1067_v42 }
 0x3b2   : > { %v1081_v44 = vmul.f32 1.442695, %v1077_v43 }
 0x3b3   : > { %v979_v45 = vpop.permute.xlu1 %978 }
 0x3b4   : > { %3753 = vpow2.f32 %v1081_v44  ;;  %3452 = vmatpush3.xpose.msk.msra.mxu0 %vm748_vm2, %v979_v45 }
 0x3b5   : > { %3461 = vmatprep.subr.mxu0 %v4167_v8 }
 0x3b7   : > { %3454 = vmatmul.mubr.msk.f32.vlgmr.msra.gmra.mrb[4].mxu0 %vm748_vm2, %v4545_v14  ;;  %v1073_v46 = vpop.xlane.xlu0 %1072  ;;  %v1414_v52 = vpop.permute.xlu1 %1413 }
 0x3b8   : > { %v1079_v47 = vsub.f32 %v1062_v36, %v1073_v46  ;;  %3463 = vmatprep.mubr.msk.f32.mxu0 %vm4168_vm1, %v4167_v8 }
 0x3ba   : > { %v1085_v48 = vmul.f32 1.442695, %v1079_v47 }
 0x3bb   : > { %v1416_v50 = vpop.permute.xlu0 %1415  ;;  %v1570_v54 = vpop.permute.xlu1 %1569 }
 0x3bc   : > { %3755 = vpow2.f32 %v1085_v48 }
 0x3be   : > { %v4620_v49 = vpop.eup %3753 }
 0x3bf   : > { %3459 = vmatmul.mubr.msk.f32.vlgmr.msra.gmra.mrb[6].mxu1 %vm1064_vm4, %v4620_v49  ;;  %v1572_v53 = vpop.permute.xlu0 %1571 }
 0x3c0   : > { %3467 = vmatpush3.msra.mxu1 %v1254_v41  ;;  %3468 = vmatprep.mubr.msk.f32.mxu1 %vm4168_vm1, %v4167_v8 }
 0x3c1   : > { %3476 = vmatprep.subr.mxu1 %v4167_v8 }
 0x3c6   : > { %v4627_v51 = vpop.eup %3755 }
 0x3c7   : > { %3469 = vmatmul.mubr.msk.f32.vlgmr.msra.gmra.mrb[8].mxu1 %vm1064_vm4, %v4627_v51 }
 0x3c8   : > { %3477 = vmatpush3.xpose.msk.msra.mxu1 %vm748_vm2, %v1416_v50  ;;  %3478 = vmatprep.mubr.msk.f32.mxu1 %vm4168_vm1, %v4167_v8 }
 0x3c9   : > { %3486 = vmatprep.subr.mxu1 %v4167_v8 }
 0x3cb   : > { %3479 = vmatmul.mubr.msk.f32.vlgmr.msra.gmra.mrb[10].mxu1 %vm748_vm2, %v1414_v52 }
 0x3cc   : > { %3487 = vmatpush3.xpose.msk.msra.mxu1 %vm748_vm2, %v1572_v53  ;;  %3488 = vmatprep.mubr.msk.f32.mxu1 %vm4168_vm1, %v4167_v8 }
 0x3cd   : > { %3496 = vmatprep.subr.mxu1 %v4167_v8 }
 0x3cf   : > { %3489 = vmatmul.mubr.msk.f32.vlgmr.msra.gmra.mrb[12].mxu1 %vm748_vm2, %v1570_v54 }
 0x3d0   : > { %3498 = vmatprep.mubr.msk.f32.mxu1 %vm4168_vm1, %v4167_v8 }
 0x3f0   : > { %v1070_v55 = vpop.xlane.xlu0 %1069 }
 0x3f4   : > { %v1330_v56 = vpop.permute.xlu0 %1329 }
 0x3f8   : > { %v1770_v57 = vpop.permute.xlu0 %1769 }
 0x3f9   : > { %3497 = vmatpush3.msra.mxu1 %v1770_v57 }
 0x3fa   : > { %3506 = vmatprep.subr.mxu1 %v4167_v8 }
 0x48a   : > { %v1050_v58 = vpop.f32.mrb[4].mxu0 }
 0x48b   : > { %v1057_v59 = vmul.f32 0.28867513, %v1050_v58  ;;  %v3455_v60 = vpop.f32.mrb[5].mxu0 }
 0x48d   : > { %v1063_v61 = vsel %vm4584_vm3, %v1057_v59, -1e+30 }
 0x48e   : > { %v1074_v62 = vsel %vm1064_vm4, %v1063_v61, -inf }
 0x48f   : > { %1075 = vmax.xlane.f32.xlu1 %v1074_v62 }
 0x492   : > { %v4647_v63 = vpop.f32.mrb[6].mxu1 }
 0x493   : > { %v3460_v0 = vpop.f32.mrb[7].mxu1 }
 0x49a   : > { %v4649_v1 = vpop.f32.mrb[8].mxu1 }
 0x49b   : > { %v3470_v2 = vpop.f32.mrb[9].mxu1 }
 0x49c   : > { %v3306_v2 = vld [vmem:[%s5010_s4] ss:$0 sm:$0xff] }
 0x49e   : > { %v1487_v4 = vpop.f32.mrb[10].mxu1 }
 0x49f   : > { %v1725_v9 = vmul.f32 0.28867513, %v1487_v4  ;;  %v3480_v10 = vpop.f32.mrb[11].mxu1 }
 0x4a0   : > { %1177 = vrot.lane.b32.xlu1 %v4547_v16, %s4170_s28 }
 0x4a1   : > { %v1729_v11 = vsel %vm4584_vm3, %v1725_v9, -1e+30 }
 0x4a2   : > { %v1643_v12 = vpop.f32.mrb[12].mxu1  ;;  %v1733_v13 = vsel %vm1064_vm4, %v1729_v11, -inf }
 0x4a3   : > { %v1727_v15 = vmul.f32 0.28867513, %v1643_v12  ;;  %1734 = vmax.xlane.f32.xlu0 %v1733_v13  ;;  %v3490_v18 = vpop.f32.mrb[13].mxu1 }
 0x4a4   : > { %1493 = vrot.lane.b32.xlu1 %v4547_v16, %s4172_s17 }
 0x4a5   : > { %v1731_v19 = vsel %vm4584_vm3, %v1727_v15, -1e+30 }
 0x4a6   : > { %v1739_v20 = vsel %vm1064_vm4, %v1731_v19, -inf }
 0x4a7   : > { %1740 = vmax.xlane.f32.xlu0 %v1739_v20 }
 0x4a8   : > { %1491 = vrot.lane.b32.xlu1 %v4547_v16, %s4171_s22 }
 0x4ac   : > { %1649 = vrot.lane.b32.xlu1 %v4545_v14, %s4172_s17 }
 0x4b0   : > { %1921 = vrot.lane.b32.xlu1 %v4549_v17, %s4173_s23  ;;  %v1078_v17 = vsub.f32 %v4606_v39, %v1070_v55 }
 0x4b2   : > { %v1083_v21 = vmul.f32 1.442695, %v1078_v17 }
 0x4b4   : > { %2111 = vrot.lane.b32.xlu1 %v4520_v5, %s4169_s20  ;;  %3757 = vpow2.f32 %v1083_v21 }
 0x4b8   : > { %2115 = vrot.lane.b32.xlu1 %v4528_v7, %s4169_s20 }
 0x4bc   : > { %1997 = vrot.lane.b32.xlu1 %v4545_v14, %s4173_s23 }
 0x4bd   : > { %1647 = vrot.lane.b32.xlu0 %v4545_v14, %s4171_s22  ;;  %s5078_s22 = sld [smem:[#allocation29_spill]] }
 0x4be   : > { %v4680_v27 = vpop.eup %3757 }
 0x4c1   : > { %2109 = vrot.lane.b32.xlu0 %v4516_v3, %s4169_s20 }
 0x4c3   : > { %p5080_p11 = scmp.ne.s32.totalorder %s5078_s22, 0 }
 0x4c5   : > { %2113 = vrot.lane.b32.xlu0 %v4522_v6, %s4169_s20  ;;  %s3274_s20 = sshll.u32 %s618_s27, 5 }
 0x4c6   : > { %s620_s28 = scalar_lea.vmem [#allocation16], %s3274_s20 }
 0x4c7   : > { %s3113_s17 = sshll.u32 %s620_s28, 4  ;;  %s4956_s17 = int_to_ptr.vmem [resolvable:$true] %s3113_s17 }
 0x51c   : > { %v1076_v5 = vpop.xlane.xlu1 %1075 }
 0x51d   : > { %v1080_v22 = vsub.f32 %v1063_v61, %v1076_v5 }
 0x51f   : > { %v1087_v25 = vmul.f32 1.442695, %v1080_v22 }
 0x520   : > { %v1178_v7 = vpop.permute.xlu1 %1177 }
 0x521   : > { %3759 = vpow2.f32 %v1087_v25  ;;  %3462 = vmatpush3.msra.mxu0 %v1178_v7 }
 0x522   : > { %3464 = vmatmul.mubr.msk.f32.vlgmr.msra.gmra.mrb[6].mxu0 %vm1064_vm4, %v4680_v27  ;;  %3471 = vmatprep.subr.mxu0 %v4167_v8 }
 0x523   : > { %3472 = vmatpush3.msra.mxu0 %v1330_v56  ;;  %3473 = vmatprep.mubr.msk.f32.mxu0 %vm4168_vm1, %v4167_v8 }
 0x524   : > { %v1494_v3 = vpop.permute.xlu1 %1493  ;;  %3481 = vmatprep.subr.mxu0 %v4167_v8 }
 0x528   : > { %v1492_v6 = vpop.permute.xlu1 %1491 }
 0x52b   : > { %v4688_v14 = vpop.eup %3759 }
 0x52c   : > { %3474 = vmatmul.mubr.msk.f32.vlgmr.msra.gmra.mrb[8].mxu0 %vm1064_vm4, %v4688_v14  ;;  %v1650_v28 = vpop.permute.xlu1 %1649 }
 0x52d   : > { %3482 = vmatpush3.xpose.msk.msra.mxu0 %vm748_vm2, %v1494_v3  ;;  %3483 = vmatprep.mubr.msk.f32.mxu0 %vm4168_vm1, %v4167_v8 }
 0x52e   : > { %3491 = vmatprep.subr.mxu0 %v4167_v8 }
 0x530   : > { %3484 = vmatmul.mubr.msk.f32.vlgmr.msra.gmra.mrb[10].mxu0 %vm748_vm2, %v1492_v6  ;;  %v1735_v29 = vpop.xlane.xlu0 %1734  ;;  %v1922_v37 = vpop.permute.xlu1 %1921 }
 0x531   : > { %3492 = vmatpush3.xpose.msk.msra.mxu0 %vm748_vm2, %v1650_v28  ;;  %v1745_v30 = vsub.f32 %v1729_v11, %v1735_v29  ;;  %3493 = vmatprep.mubr.msk.f32.mxu0 %vm4168_vm1, %v4167_v8 }
 0x532   : > { %3501 = vmatprep.subr.mxu0 %v4167_v8 }
 0x533   : > { %v1749_v31 = vmul.f32 1.442695, %v1745_v30 }
 0x534   : > { %v1741_v32 = vpop.xlane.xlu0 %1740  ;;  %v2112_v41 = vpop.permute.xlu1 %2111 }
 0x535   : > { %3761 = vpow2.f32 %v1749_v31  ;;  %v1747_v33 = vsub.f32 %v1731_v19, %v1741_v32 }
 0x537   : > { %v1753_v34 = vmul.f32 1.442695, %v1747_v33 }
 0x538   : > { %v1648_v35 = vpop.permute.xlu0 %1647  ;;  %v2116_v43 = vpop.permute.xlu1 %2115 }
 0x539   : > { %3763 = vpow2.f32 %v1753_v34  ;;  %3494 = vmatmul.mubr.msk.f32.vlgmr.msra.gmra.mrb[12].mxu0 %vm748_vm2, %v1648_v35 }
 0x53a   : > { %3503 = vmatprep.mubr.msk.f32.mxu0 %vm4168_vm1, %v4167_v8 }
 0x53c   : > { %v2110_v39 = vpop.permute.xlu0 %2109 }
 0x53f   : > { %v4704_v36 = vpop.eup %3761 }
 0x540   : > { %3499 = vmatmul.mubr.msk.f32.vlgmr.msra.gmra.mrb[14].mxu1 %vm1064_vm4, %v4704_v36  ;;  %v2114_v42 = vpop.permute.xlu0 %2113 }
 0x541   : > { %3507 = vmatpush3.msra.mxu1 %v1922_v37  ;;  %3508 = vmatprep.mubr.msk.f32.mxu1 %vm4168_vm1, %v4167_v8  ;;  %v1998_v37 = vpop.permute.xlu1 %1997 }
 0x542   : > { %3516 = vmatprep.subr.mxu1 %v2101_v38 }
 0x543   : > { %v4713_v40 = vpop.eup %3763 }
 0x544   : > { %3509 = vmatmul.mubr.msk.f32.vlgmr.msra.gmra.mrb[16].mxu1 %vm1064_vm4, %v4713_v40 }
 0x545   : > { %3517 = vmatpush3.msra.mxu1 %v2101_v38  ;;  %3518 = vmatprep.mubr.msk.f32.mxu1 %vm1064_vm4, %v2110_v39 }
 0x548   : > { %3519 = vmatmul.mubr.msk.f32.vlgmr.msra.gmra.mrb[18].mxu1 %vm1064_vm4, %v2112_v41 }
 0x549   : > { %3521 = vmatprep.mubr.msk.f32.mxu1 %vm1064_vm4, %v2114_v42 }
 0x54c   : > { %3522 = vmatmul.mubr.msk.f32.gmra.mrb[20].mxu1 %vm1064_vm4, %v2116_v43  ;;  %v2254_v43 = vld [vmem:[#allocation5] sm:$0xff] }
 0x5f5   : > { %v4721_v44 = vpop.f32.mrb[6].mxu0 }
 0x5f6   : > { %v3465_v45 = vpop.f32.mrb[7].mxu0 }
 0x5ff   : > { %v4723_v46 = vpop.f32.mrb[8].mxu0 }
 0x600   : > { %v3475_v47 = vpop.f32.mrb[9].mxu0 }
 0x603   : > { %v1565_v48 = vpop.f32.mrb[10].mxu0 }
 0x604   : > { %v1726_v50 = vmul.f32 0.28867513, %v1565_v48  ;;  %v3485_v52 = vpop.f32.mrb[11].mxu0 }
 0x606   : > { %v1730_v53 = vsel %vm4584_vm3, %v1726_v50, -1e+30 }
 0x607   : > { %v1736_v54 = vsel %vm1064_vm4, %v1730_v53, -inf }
 0x608   : > { %1737 = vmax.xlane.f32.xlu0 %v1736_v54 }
 0x60c   : > { %v1721_v55 = vpop.f32.mrb[12].mxu0 }
 0x60d   : > { %v1728_v56 = vmul.f32 0.28867513, %v1721_v55  ;;  %v3495_v57 = vpop.f32.mrb[13].mxu0 }
 0x60f   : > { %v1732_v58 = vsel %vm4584_vm3, %v1728_v56, -1e+30 }
 0x610   : > { %v1742_v59 = vsel %vm1064_vm4, %v1732_v58, -inf }
 0x611   : > { %1743 = vmax.xlane.f32.xlu1 %v1742_v59 }
 0x613   : > { %v4731_v60 = vpop.f32.mrb[14].mxu1 }
 0x614   : > { %v3500_v61 = vpop.f32.mrb[15].mxu1 }
 0x615   : > { %v3315_v61 = vld [vmem:[%s5012_s6] ss:$0 sm:$0xff] }
 0x617   : > { %v4733_v62 = vpop.f32.mrb[16].mxu1 }
 0x618   : > { %v3510_v0 = vpop.f32.mrb[17].mxu1 }
 0x61b   : > { %v3520_v4 = vpop.f32.mrb[18].mxu1 }
 0x61c   : > { %v4738_v9 = vadd.f32 %v3520_v4, %v3306_v2  ;;  %v2191_v10 = vpop.f32.mrb[19].mxu1 }
 0x61d   : > { %v2192_v11 = vadd.f32 %v3306_v2, %v2191_v10 }
 0x61e   : > { %v3312_v26 = vmul.f32 -1.442695, %v4738_v9  ;;  %1845 = vrot.lane.b32.xlu0 %v4547_v16, %s4173_s23  ;;  %s3347_s23 = sshll.u32 %s4289_s25, 9  ;;  %s4073_s25 = scalar_lea.vmem %s4956_s17, 512 }
 0x61f   : > { %v3311_v12 = vmul.f32 -1.442695, %v2192_v11  ;;  %v3523_v13 = vpop.f32.mrb[20].mxu1  ;;  %s4961_s14 = scalar_lea.hbm %s5079_s5, %s3347_s23  ;;  %p4074_p8 = scmp.ne.s32.totalorder %s4956_s17, %s4073_s25 }
 0x620   : > { %3765 = vpow2.f32 %v3312_v26  ;;  %v2207_v15 = vadd.f32 %v3523_v13, %v3306_v2  ;;  %v2201_v18 = vpop.f32.mrb[21].mxu1  ;;  %v2360_v13 = vadd.s32 %v4580_v24, %v4578_v23 }
 0x621   : > { %3767 = vpow2.f32 %v3311_v12  ;;  %v2202_v19 = vadd.f32 %v3306_v2, %v2201_v18  ;;  %p4075_p13 = pnand %p4074_p8, %p5080_p11 }
 0x622   : > { %v3314_v20 = vmul.f32 -1.442695, %v2207_v15 }
 0x623   : > { %v3313_v17 = vmul.f32 -1.442695, %v2202_v19  ;;  %p4076_p1 = pneg %p4075_p13 }
 0x624   : > { %3769 = vpow2.f32 %v3314_v20 }
 0x625   : > { %3771 = vpow2.f32 %v3313_v17 }
 0x62a   : > { %v3766_v21 = vpop.eup %3765 }
 0x62b   : > { %v3768_v5 = vpop.eup %3767  ;;  %v2223_v22 = vadd.f32 1.0, %v3766_v21 }
 0x62c   : > { %v2222_v25 = vadd.f32 1.0, %v3768_v5 }
 0x62d   : > { %3773 = vrcp.f32 %v2223_v22 }
 0x62e   : > { %v3770_v7 = vpop.eup %3769  ;;  %3775 = vrcp.f32 %v2222_v25 }
 0x62f   : > { %v3772_v3 = vpop.eup %3771  ;;  %v2225_v16 = vadd.f32 1.0, %v3770_v7 }
 0x630   : > { %v2224_v6 = vadd.f32 1.0, %v3772_v3 }
 0x631   : > { %3777 = vrcp.f32 %v2225_v16 }
 0x632   : > { %3779 = vrcp.f32 %v2224_v6 }
 0x637   : > { %v3774_v28 = vpop.eup %3773 }
 0x638   : > { %v3776_v29 = vpop.eup %3775  ;;  %2240 = vrot.lane.b32.xlu1 %v3774_v28, %s4174_s21 }
 0x639   : > { %2238 = vrot.lane.b32.xlu0 %v3776_v29, %s4174_s21 }
 0x63b   : > { %v3778_v30 = vpop.eup %3777 }
 0x63c   : > { %v3780_v31 = vpop.eup %3779  ;;  %2244 = vrot.lane.b32.xlu1 %v3778_v30, %s4174_s21 }
 0x63d   : > { %2242 = vrot.lane.b32.xlu0 %v3780_v31, %s4174_s21  ;;  %s5075_s21 = sld [smem:[#allocation35_spill]] }
 0x643   : > { %s5076_s18 = smov %s5075_s21 }
 0x695   : > { %v1738_v32 = vpop.xlane.xlu0 %1737 }
 0x696   : > { %v1746_v33 = vsub.f32 %v1730_v53, %v1738_v32 }
 0x698   : > { %v1751_v34 = vmul.f32 1.442695, %v1746_v33 }
 0x699   : > { %v1846_v35 = vpop.permute.xlu0 %1845 }
 0x69a   : > { %3781 = vpow2.f32 %v1751_v34  ;;  %3502 = vmatpush3.msra.mxu0 %v1846_v35 }
 0x69b   : > { %3511 = vmatprep.subr.mxu0 %v4167_v8 }
 0x69e   : > { %v1744_v38 = vpop.xlane.xlu1 %1743 }
 0x69f   : > { %v1748_v39 = vsub.f32 %v1732_v58, %v1744_v38 }
 0x6a1   : > { %v1755_v41 = vmul.f32 1.442695, %v1748_v39 }
 0x6a3   : > { %3783 = vpow2.f32 %v1755_v41 }
 0x6a4   : > { %v4744_v42 = vpop.eup %3781 }
 0x6a5   : > { %3504 = vmatmul.mubr.msk.f32.vlgmr.msra.gmra.mrb[14].mxu0 %vm1064_vm4, %v4744_v42 }
 0x6a6   : > { %3512 = vmatpush3.msra.mxu0 %v1998_v37  ;;  %3513 = vmatprep.mubr.msk.f32.mxu0 %vm4168_vm1, %v4167_v8 }
 0x6a7   : > { %3524 = vmatprep.subr.mxu0 %v2254_v43 }
 0x6aa   : > { %v2241_v45 = vpop.permute.xlu1 %2240 }
 0x6ab   : > { %v2239_v47 = vpop.permute.xlu0 %2238  ;;  %v4759_v53 = vmul.f32 %v2241_v45, %v4738_v9 }
 0x6ac   : > { %v4750_v48 = vmul.f32 %v2239_v47, %v2192_v11 }
 0x6ad   : > { %v4752_v50 = vpop.eup %3783 }
 0x6ae   : > { %3514 = vmatmul.mubr.msk.f32.vlgmr.msra.gmra.mrb[16].mxu0 %vm1064_vm4, %v4752_v50  ;;  %v2245_v8 = vpop.permute.xlu1 %2244 }
 0x6af   : > { %3525 = vmatpush3.msra.mxu0 %v2254_v43  ;;  %3526 = vmatprep.mubr.msk.f32.mxu0 %vm1064_vm4, %v4750_v48  ;;  %v2243_v52 = vpop.permute.xlu0 %2242  ;;  %v4767_v55 = vmul.f32 %v2245_v8, %v2207_v15  ;;  %v3320_v15 = vadd.s32 4294967295, %v2360_v13 }
 0x6b0   : > { %v4761_v54 = vmul.f32 %v2243_v52, %v2202_v19 }
 0x6b1   : > { %vm2362_vm6 = vcmp.ge.s32.totalorder %v3320_v15, 0 }
 0x6b2   : > { %3527 = vmatmul.mubr.msk.f32.vlgmr.msra.gmra.mrb[18].mxu0 %vm1064_vm4, %v4759_v53  ;;  %vm4781_vm7 = vmand %vm2359_vm5, %vm2362_vm6 }
 0x6b3   : > { %3529 = vmatprep.mubr.msk.f32.mxu0 %vm1064_vm4, %v4761_v54 }
 0x6b6   : > { %3530 = vmatmul.mubr.msk.f32.gmra.mrb[20].mxu0 %vm1064_vm4, %v4767_v55 }
 0x778   : > { %v4771_v56 = vpop.f32.mrb[14].mxu0 }
 0x779   : > { %v3505_v57 = vpop.f32.mrb[15].mxu0 }
 0x781   : > { %v4773_v58 = vpop.f32.mrb[16].mxu0 }
 0x782   : > { %v3515_v59 = vpop.f32.mrb[17].mxu0 }
 0x783   : > { %v4176_v59 = vmov 0  }
 0x784   : > { %3739 = vset.pattern.permute.xlu1 %v4176_v59  ;;  %3745 = vset.pattern.permute.xlu0 %v4176_v59 }
 0x785   : > { %v3528_v0 = vpop.f32.mrb[18].mxu0 }
 0x786   : > { %v2346_v2 = vadd.f32 %v3528_v0, %v3315_v61  ;;  %v2340_v4 = vpop.f32.mrb[19].mxu0 }
 0x787   : > { %v2341_v9 = vadd.f32 %v3315_v61, %v2340_v4 }
 0x788   : > { %2419 = vrot.lane.b32.xlu1 %v2346_v2, %s4175_s29  ;;  %v2365_v17 = vsel %vm4781_vm7, %v2346_v2, -1e+30 }
 0x789   : > { %2417 = vrot.lane.b32.xlu0 %v2341_v9, %s4175_s29  ;;  %v3531_v10 = vpop.f32.mrb[20].mxu0  ;;  %v2364_v19 = vsel %vm4781_vm7, %v2341_v9, -1e+30  ;;  %v2372_v21 = vsel %vm2368_vm8, %v2365_v17, -inf }
 0x78a   : > { %v2356_v11 = vadd.f32 %v3531_v10, %v3315_v61  ;;  %v2350_v26 = vpop.f32.mrb[21].mxu0  ;;  %v2369_v20 = vsel %vm2368_vm8, %v2364_v19, -inf }
 0x78b   : > { %v2351_v12 = vadd.f32 %v3315_v61, %v2350_v26 }
 0x78c   : > { %2423 = vrot.lane.b32.xlu1 %v2356_v11, %s4175_s29  ;;  %v2367_v33 = vsel %vm4781_vm7, %v2356_v11, -1e+30 }
 0x78d   : > { %2421 = vrot.lane.b32.xlu0 %v2351_v12, %s4175_s29  ;;  %v2366_v16 = vsel %vm4781_vm7, %v2351_v12, -1e+30  ;;  %v2378_v34 = vsel %vm2368_vm8, %v2367_v33, -inf  ;;  %s4077_s29 = sshll.u32 %s4180_s24, 4  ;;  %s4078_s29 = int_to_ptr.vmem [resolvable:$false] %s4077_s29 }
 0x78e   : > { %v2375_v30 = vsel %vm2368_vm8, %v2366_v16, -inf  ;;  %p4080_p0 = scmp.lt.s32.totalorder %s4956_s17, %s4078_s29 }
 0x7ac   : > { %2370 = vmax.xlane.f32.xlu0 %v2369_v20 }
 0x7b0   : > { %2373 = vmax.xlane.f32.xlu0 %v2372_v21 }
 0x7fa   : > { %v2420_v5 = vpop.permute.xlu1 %2419 }
 0x7fb   : > { %v2430_v24 = vsel %vm4781_vm7, %v2420_v5, -1e+30  ;;  %v2418_v22 = vpop.permute.xlu0 %2417 }
 0x7fc   : > { %v2429_v25 = vsel %vm4781_vm7, %v2418_v22, -1e+30  ;;  %v2436_v7 = vsel %vm2368_vm8, %v2430_v24, -inf }
 0x7fd   : > { %2437 = vmax.xlane.f32.xlu0 %v2436_v7  ;;  %v2433_v3 = vsel %vm2368_vm8, %v2429_v25, -inf }
 0x7fe   : > { %2434 = vmax.xlane.f32.xlu1 %v2433_v3  ;;  %v2424_v6 = vpop.permute.xlu1 %2423 }
 0x7ff   : > { %v2422_v28 = vpop.permute.xlu0 %2421  ;;  %v2432_v32 = vsel %vm4781_vm7, %v2424_v6, -1e+30 }
 0x800   : > { %v2431_v29 = vsel %vm4781_vm7, %v2422_v28, -1e+30  ;;  %v2442_v35 = vsel %vm2368_vm8, %v2432_v32, -inf }
 0x801   : > { %v2439_v31 = vsel %vm2368_vm8, %v2431_v29, -inf }
 0x802   : > { %2376 = vmax.xlane.f32.xlu1 %v2375_v30  ;;  %2440 = vmax.xlane.f32.xlu0 %v2439_v31 }
 0x806   : > { %2379 = vmax.xlane.f32.xlu1 %v2378_v34  ;;  %2443 = vmax.xlane.f32.xlu0 %v2442_v35 }
 0x839   : > { %v2371_v37 = vpop.xlane.xlu0 %2370 }
 0x83a   : > { %v2381_v38 = vsub.f32 %v2364_v19, %v2371_v37 }
 0x83c   : > { %v2385_v43 = vmul.f32 1.442695, %v2381_v38 }
 0x83d   : > { %v2374_v39 = vpop.xlane.xlu0 %2373 }
 0x83e   : > { %v2382_v41 = vsub.f32 %v2365_v17, %v2374_v39  ;;  %v4177_v39 = vmov 1  }
 0x840   : > { %v2387_v45 = vmul.f32 1.442695, %v2382_v41 }
 0x842   : > { %3785 = vpow2.f32 %v2387_v45 }
 0x843   : > { %3787 = vpow2.f32 %v2385_v43 }
 0x84c   : > { %v3786_v47 = vpop.eup %3785 }
 0x84d   : > { %v2396_v52 = vsel %vm2368_vm8, %v3786_v47, 0.0  ;;  %v3788_v8 = vpop.eup %3787 }
 0x84e   : > { %2397 = vadd.xlane.f32.xlu1 %v2396_v52  ;;  %v2393_v57 = vsel %vm2368_vm8, %v3788_v8, 0.0 }
 0x852   : > { %2394 = vadd.xlane.f32.xlu1 %v2393_v57 }
 0x88a   : > { %v2438_v61 = vpop.xlane.xlu0 %2437 }
 0x88b   : > { %v2446_v0 = vsub.f32 %v2430_v24, %v2438_v61  ;;  %v2435_v2 = vpop.xlane.xlu1 %2434 }
 0x88c   : > { %v2445_v4 = vsub.f32 %v2429_v25, %v2435_v2 }
 0x88d   : > { %v2451_v9 = vmul.f32 1.442695, %v2446_v0 }
 0x88e   : > { %v2449_v10 = vmul.f32 1.442695, %v2445_v4 }
 0x88f   : > { %3789 = vpow2.f32 %v2451_v9  ;;  %v2377_v11 = vpop.xlane.xlu1 %2376  ;;  %v2441_v26 = vpop.xlane.xlu0 %2440 }
 0x890   : > { %v2383_v12 = vsub.f32 %v2366_v16, %v2377_v11  ;;  %v2447_v13 = vsub.f32 %v2431_v29, %v2441_v26  ;;  %3791 = vpow2.f32 %v2449_v10 }
 0x892   : > { %v2389_v15 = vmul.f32 1.442695, %v2383_v12  ;;  %v2453_v18 = vmul.f32 1.442695, %v2447_v13 }
 0x893   : > { %v2380_v19 = vpop.xlane.xlu1 %2379  ;;  %v2444_v20 = vpop.xlane.xlu0 %2443 }
 0x894   : > { %3793 = vpow2.f32 %v2389_v15  ;;  %v2384_v17 = vsub.f32 %v2367_v33, %v2380_v19  ;;  %v2448_v21 = vsub.f32 %v2432_v32, %v2444_v20  ;;  %v2594_v19 = vld [vmem:[#allocation7] sm:$0xff] }
 0x895   : > { %3795 = vpow2.f32 %v2453_v18  ;;  %3532 = vmatprep.subr.mxu1 %v2594_v19 }
 0x896   : > { %v2391_v5 = vmul.f32 1.442695, %v2384_v17  ;;  %v2455_v24 = vmul.f32 1.442695, %v2448_v21  ;;  %3533 = vmatpush3.msra.mxu1 %v2594_v19  ;;  %v1757_v17 = vsel %vm1064_vm4, %v4704_v36, 0.0  ;;  %v1763_v21 = vsel %vm1064_vm4, %v4713_v40, 0.0 }
 0x897   : > { %v1760_v36 = vsel %vm1064_vm4, %v4744_v42, 0.0  ;;  %v1089_v40 = vsel %vm1064_vm4, %v4620_v49, 0.0  ;;  %v2478_v42 = vrot.slane %v4759_v53, 7 }
 0x898   : > { %3797 = vpow2.f32 %v2391_v5  ;;  %v1766_v5 = vsel %vm1064_vm4, %v4752_v50, 0.0  ;;  %v1095_v50 = vsel %vm1064_vm4, %v4627_v51, 0.0 }
 0x899   : > { %v3790_v22 = vpop.eup %3789  ;;  %3799 = vpow2.f32 %v2455_v24  ;;  %v1092_v24 = vsel %vm1064_vm4, %v4680_v27, 0.0 }
 0x89a   : > { %v2460_v25 = vsel %vm2368_vm8, %v3790_v22, 0.0  ;;  %v3792_v7 = vpop.eup %3791 }
 0x89b   : > { %2461 = vadd.xlane.f32.xlu0 %v2460_v25  ;;  %v2457_v16 = vsel %vm2368_vm8, %v3792_v7, 0.0 }
 0x89e   : > { %v3794_v3 = vpop.eup %3793 }
 0x89f   : > { %v4815_v6 = vpop.eup %3795  ;;  %2458 = vadd.xlane.f32.xlu0 %v2457_v16  ;;  %v2399_v28 = vsel %vm2368_vm8, %v3794_v3, 0.0 }
 0x8a0   : > { %2400 = vadd.xlane.f32.xlu1 %v2399_v28  ;;  %v2463_v30 = vsel %vm2368_vm8, %v4815_v6, 0.0  ;;  %v2477_v28 = vrot.slane %v4750_v48, 7 }
 0x8a2   : > { %v3798_v29 = vpop.eup %3797 }
 0x8a3   : > { %v3800_v31 = vpop.eup %3799  ;;  %2464 = vadd.xlane.f32.xlu0 %v2463_v30  ;;  %v2402_v32 = vsel %vm2368_vm8, %v3798_v29, 0.0  ;;  %v2480_v30 = vrot.slane %v4767_v55, 7 }
 0x8a4   : > { %2403 = vadd.xlane.f32.xlu1 %v2402_v32  ;;  %v2466_v33 = vsel %vm2368_vm8, %v3800_v31, 0.0 }
 0x8a7   : > { %2467 = vadd.xlane.f32.xlu0 %v2466_v33  ;;  %v2484_v33 = vsel %vm2481_vm10, %v2477_v28, %v2478_v42 }
 0x8db   : > { %v2398_v34 = vpop.xlane.xlu1 %2397 }
 0x8dc   : > { %3801 = vrcp.f32 %v2398_v34 }
 0x8df   : > { %v2395_v35 = vpop.xlane.xlu1 %2394 }
 0x8e0   : > { %3803 = vrcp.f32 %v2395_v35  ;;  %v2485_v35 = vsel %vm2481_vm10, %v2480_v30, %v2477_v28 }
 0x8e6   : > { %v3802_v37 = vpop.eup %3801 }
 0x8e7   : > { %v2410_v38 = vmul.f32 %v3802_v37, %v3786_v47 }
 0x8e9   : > { %2493 = vperm.xlu1 %3739, %v2410_v38  }
 0x8ea   : > { %v3804_v41 = vpop.eup %3803 }
 0x8eb   : > { %v2409_v43 = vmul.f32 %v3804_v41, %v3788_v8 }
 0x8ed   : > { %3740 = vset.pattern.permute.xlu1 %v4177_v39 }
 0x8ee   : > { %2544 = vperm.xlu1 %3740, %v2410_v38  }
 0x8f2   : > { %3741 = vset.pattern.permute.xlu1 %v4176_v59 }
 0x8f3   : > { %2488 = vperm.xlu1 %3741, %v2409_v43  }
 0x8f7   : > { %3742 = vset.pattern.permute.xlu1 %v4177_v39 }
 0x8f8   : > { %2540 = vperm.xlu1 %3742, %v2409_v43  }
 0x8fc   : > { %3743 = vset.pattern.permute.xlu1 %v4176_v59 }
 0x928   : > { %v2462_v45 = vpop.xlane.xlu0 %2461 }
 0x92c   : > { %v2459_v52 = vpop.xlane.xlu0 %2458 }
 0x92d   : > { %3805 = vrcp.f32 %v2459_v52  ;;  %v2401_v57 = vpop.xlane.xlu1 %2400 }
 0x92e   : > { %3807 = vrcp.f32 %v2401_v57 }
 0x92f   : > { %3809 = vrcp.f32 %v2462_v45  ;;  %v3321_v45 = vld [vmem:[#allocation8] ss:$0 sm:$0xff] }
 0x930   : > { %v2465_v47 = vpop.xlane.xlu0 %2464 }
 0x931   : > { %v2404_v2 = vpop.xlane.xlu1 %2403 }
 0x934   : > { %v2468_v61 = vpop.xlane.xlu0 %2467 }
 0x935   : > { %3811 = vrcp.f32 %v2468_v61 }
 0x936   : > { %3813 = vrcp.f32 %v2404_v2  ;;  %v2479_v2 = vrot.slane %v4761_v54, 7 }
 0x937   : > { %v3806_v0 = vpop.eup %3805  ;;  %3815 = vrcp.f32 %v2465_v47 }
 0x938   : > { %v3808_v4 = vpop.eup %3807  ;;  %v2473_v8 = vmul.f32 %v3806_v0, %v3792_v7 }
 0x939   : > { %v2411_v9 = vmul.f32 %v3808_v4, %v3794_v3  ;;  %v3810_v10 = vpop.eup %3809 }
 0x93a   : > { %2508 = vperm.xlu0 %3745, %v2473_v8   ;;  %v2474_v11 = vmul.f32 %v3810_v10, %v3790_v22 }
 0x93b   : > { %2498 = vperm.xlu1 %3743, %v2411_v9  }
 0x93e   : > { %3746 = vset.pattern.permute.xlu0 %v4177_v39 }
 0x93f   : > { %v3812_v26 = vpop.eup %3811  ;;  %2513 = vperm.xlu1 %3743, %v2474_v11   ;;  %2548 = vperm.xlu0 %3746, %v2411_v9  }
 0x940   : > { %v2476_v12 = vmul.f32 %v3812_v26, %v3800_v31  ;;  %v3814_v13 = vpop.eup %3813 }
 0x941   : > { %v2412_v15 = vmul.f32 %v3814_v13, %v3798_v29  ;;  %v3816_v18 = vpop.eup %3815 }
 0x942   : > { %v2475_v20 = vmul.f32 %v3816_v18, %v4815_v6  ;;  %v2482_v18 = vsel %vm2481_vm10, %v2479_v2, %v2480_v30 }
 0x943   : > { %3744 = vset.pattern.permute.xlu1 %v4177_v39  ;;  %3749 = vset.pattern.permute.xlu0 %v4176_v59 }
 0x944   : > { %2560 = vperm.xlu1 %3744, %v2474_v11   ;;  %2523 = vperm.xlu0 %3749, %v2476_v12  }
 0x948   : > { %3747 = vset.pattern.permute.xlu1 %v4176_v59  ;;  %3752 = vset.pattern.permute.xlu0 %v4177_v39 }
 0x949   : > { %2503 = vperm.xlu1 %3747, %v2412_v15  }
 0x94d   : > { %3748 = vset.pattern.permute.xlu1 %v4177_v39 }
 0x94e   : > { %2556 = vperm.xlu1 %3748, %v2473_v8  }
 0x952   : > { %2552 = vperm.xlu1 %3748, %v2412_v15  }
 0x956   : > { %3750 = vset.pattern.permute.xlu1 %v4176_v59  ;;  %v1098_v59 = vsel %vm1064_vm4, %v4688_v14, 0.0 }
 0x957   : > { %2518 = vperm.xlu1 %3750, %v2475_v20  }
 0x95b   : > { %3751 = vset.pattern.permute.xlu1 %v4177_v39 }
 0x95c   : > { %2564 = vperm.xlu1 %3751, %v2475_v20  }
 0x960   : > { %2568 = vperm.xlu1 %3751, %v2476_v12  }
 0x963   : > { %1758 = vadd.xlane.f32.xlu0 %v1757_v17 }
 0x967   : > { %1764 = vadd.xlane.f32.xlu0 %v1763_v21 }
 0x968   : > { %v2494_v22 = vpop.permute.xlu1 %2493 }
 0x96b   : > { %1767 = vadd.xlane.f32.xlu0 %v1766_v5 }
 0x96d   : > { %v2545_v25 = vpop.permute.xlu1 %2544 }
 0x96f   : > { %1093 = vadd.xlane.f32.xlu0 %v1092_v24 }
 0x972   : > { %v2489_v27 = vpop.permute.xlu1 %2488 }
 0x973   : > { %1099 = vadd.xlane.f32.xlu0 %v1098_v59 }
 0x977   : > { %v2541_v7 = vpop.permute.xlu1 %2540 }
 0x984   : > { %1761 = vadd.xlane.f32.xlu1 %v1760_v36 }
 0x988   : > { %1090 = vadd.xlane.f32.xlu1 %v1089_v40 }
 0x98c   : > { %1096 = vadd.xlane.f32.xlu1 %v1095_v50 }
 0x9b9   : > { %v2509_v29 = vpop.permute.xlu0 %2508 }
 0x9ba   : > { %v2499_v3 = vpop.permute.xlu1 %2498  ;;  %v2527_v31 = vsel %vm2526_vm9, %v2489_v27, %v2509_v29  ;;  %v2720_v27 = vld [vmem:[%s5016_s10 + $0x8] sm:$0xff] }
 0x9bb   : > { %v2531_v39 = vmul.f32 %v2527_v31, %v2485_v35 }
 0x9be   : > { %v2514_v16 = vpop.permute.xlu1 %2513  ;;  %v2549_v0 = vpop.permute.xlu0 %2548 }
 0x9bf   : > { %v2528_v51 = vsel %vm2526_vm9, %v2494_v22, %v2514_v16 }
 0x9c0   : > { %v2532_v37 = vmul.f32 %v2528_v51, %v2484_v33 }
 0x9c3   : > { %v2561_v14 = vpop.permute.xlu1 %2560  ;;  %v2524_v10 = vpop.permute.xlu0 %2523 }
 0x9c4   : > { %v2572_v49 = vsel %vm2526_vm9, %v2545_v25, %v2561_v14  ;;  %v3322_v14 = vld [vmem:[%s5074_s9] ss:$0 sm:$0xff] }
 0x9c5   : > { %v2576_v32 = vmul.f32 %v2572_v49, %v4759_v53 }
 0x9c7   : > { %v2580_v43 = vadd.f32 %v2576_v32, %v2532_v37 }
 0x9c8   : > { %v2504_v6 = vpop.permute.xlu1 %2503 }
 0x9c9   : > { %v2591_v61 = vadd.f32 %v3321_v45, %v2580_v43  ;;  %v2530_v12 = vsel %vm2526_vm9, %v2504_v6, %v2524_v10 }
 0x9ca   : > { %v2534_v20 = vmul.f32 %v2530_v12, %v2482_v18 }
 0x9cd   : > { %v2557_v34 = vpop.permute.xlu1 %2556 }
 0x9ce   : > { %v2571_v38 = vsel %vm2526_vm9, %v2541_v7, %v2557_v34 }
 0x9cf   : > { %v2575_v41 = vmul.f32 %v2571_v38, %v4750_v48  ;;  %v2483_v48 = vsel %vm2481_vm10, %v2478_v42, %v2479_v2 }
 0x9d1   : > { %v2579_v52 = vadd.f32 %v2575_v41, %v2531_v39  ;;  %v2553_v57 = vpop.permute.xlu1 %2552 }
 0x9d3   : > { %v2590_v47 = vadd.f32 %v3321_v45, %v2579_v52 }
 0x9d5   : > { %3534 = vmatprep.mubr.msk.f32.mxu1 %vm1064_vm4, %v2590_v47 }
 0x9d6   : > { %v2519_v53 = vpop.permute.xlu1 %2518  ;;  %3535 = vmatmul.mubr.msk.f32.vlgmr.msra.gmra.mrb[22].mxu1 %vm1064_vm4, %v2591_v61 }
 0x9d7   : > { %v2529_v4 = vsel %vm2526_vm9, %v2499_v3, %v2519_v53 }
 0x9d8   : > { %v2533_v11 = vmul.f32 %v2529_v4, %v2483_v48 }
 0x9db   : > { %v2565_v8 = vpop.permute.xlu1 %2564 }
 0x9dc   : > { %v2573_v9 = vsel %vm2526_vm9, %v2549_v0, %v2565_v8 }
 0x9dd   : > { %v2577_v26 = vmul.f32 %v2573_v9, %v4761_v54 }
 0x9df   : > { %v2581_v13 = vadd.f32 %v2577_v26, %v2533_v11  ;;  %v2569_v15 = vpop.permute.xlu1 %2568 }
 0x9e0   : > { %v2574_v19 = vsel %vm2526_vm9, %v2553_v57, %v2569_v15 }
 0x9e1   : > { %v2592_v17 = vadd.f32 %v3321_v45, %v2581_v13  ;;  %v2578_v21 = vmul.f32 %v2574_v19, %v4767_v55  ;;  %v3327_v19 = vld [vmem:[#allocation10] ss:$0 sm:$0xff] }
 0x9e3   : > { %v2582_v5 = vadd.f32 %v2578_v21, %v2534_v20  ;;  %3537 = vmatprep.mubr.msk.f32.mxu1 %vm1064_vm4, %v2592_v17 }
 0x9e5   : > { %v2593_v24 = vadd.f32 %v3321_v45, %v2582_v5 }
 0x9e7   : > { %3538 = vmatmul.mubr.msk.f32.gmra.mrb[24].mxu1 %vm1064_vm4, %v2593_v24 }
 0x9f0   : > { %v1759_v54 = vpop.xlane.xlu0 %1758 }
 0x9f1   : > { %3817 = vrcp.f32 %v1759_v54 }
 0x9f4   : > { %v1765_v23 = vpop.xlane.xlu0 %1764 }
 0x9f8   : > { %v1768_v16 = vpop.xlane.xlu0 %1767 }
 0x9fb   : > { %v3818_v59 = vpop.eup %3817 }
 0x9fc   : > { %v2077_v36 = vmul.f32 %v3818_v59, %v4731_v60  ;;  %v2719_v60 = vld [vmem:[%s5016_s10] sm:$0xff]  ;;  %v1094_v35 = vpop.xlane.xlu0 %1093 }
 0x9fd   : > { %v3582_v7 = vpack.c.bf16 %v2720_v27, %v2719_v60 }
 0x9fe   : > { %2085 = vrot.lane.b32.xlu1 %v2077_v36, %s4178_s26 }
 0x9ff   : > { %3583 = vmatprep.subr.bf16.mxu0 %v3582_v7 }
 0xa00   : > { %3585 = vmatpush3.bf16.msra.mxu0 %v3582_v7  ;;  %v1100_v39 = vpop.xlane.xlu0 %1099 }
 0xa11   : > { %v1762_v40 = vpop.xlane.xlu1 %1761 }
 0xa12   : > { %3819 = vrcp.f32 %v1762_v40 }
 0xa13   : > { %3821 = vrcp.f32 %v1765_v23 }
 0xa14   : > { %3823 = vrcp.f32 %v1768_v16 }
 0xa15   : > { %v1091_v34 = vpop.xlane.xlu1 %1090 }
 0xa16   : > { %3825 = vrcp.f32 %v1091_v34 }
 0xa17   : > { %3827 = vrcp.f32 %v1094_v35 }
 0xa19   : > { %v1097_v37 = vpop.xlane.xlu1 %1096 }
 0xa1a   : > { %3829 = vrcp.f32 %v1097_v37 }
 0xa1b   : > { %3831 = vrcp.f32 %v1100_v39 }
 0xa1c   : > { %v3820_v50 = vpop.eup %3819 }
 0xa1d   : > { %v2078_v55 = vmul.f32 %v3820_v50, %v4771_v56  ;;  %v3822_v22 = vpop.eup %3821  ;;  %v2721_v56 = vld [vmem:[%s5016_s10 + $0x10] sm:$0xff] }
 0xa1e   : > { %v2079_v25 = vmul.f32 %v3822_v22, %v4733_v62  ;;  %v2722_v62 = vld [vmem:[%s5016_s10 + $0x18] sm:$0xff]  ;;  %v3824_v49 = vpop.eup %3823 }
 0xa1f   : > { %2087 = vrot.lane.b32.xlu0 %v2078_v55, %s4178_s26  ;;  %v3586_v3 = vpack.c.bf16 %v2722_v62, %v2721_v56  ;;  %v2080_v30 = vmul.f32 %v3824_v49, %v4773_v58  ;;  %v3332_v22 = vld [vmem:[#allocation13] ss:$0 sm:$0xff] }
 0xa20   : > { %v3826_v41 = vpop.eup %3825 }
 0xa21   : > { %3587 = vmatprep.subr.bf16.mxu0 %v3586_v3  ;;  %v3828_v43 = vpop.eup %3827  ;;  %v1409_v58 = vmul.f32 %v3826_v41, %v4647_v63 }
 0xa22   : > { %3589 = vmatpush3.bf16.msra.mxu0 %v3586_v3  ;;  %v1410_v57 = vmul.f32 %v3828_v43, %v4721_v44 }
 0xa23   : > { %2089 = vrot.lane.b32.xlu0 %v2079_v25, %s4178_s26 }
 0xa24   : > { %v3830_v63 = vpop.eup %3829 }
 0xa25   : > { %v3832_v4 = vpop.eup %3831  ;;  %v1411_v48 = vmul.f32 %v3830_v63, %v4649_v1  ;;  %v2832_v1 = vld [vmem:[#allocation11] sm:$0xff] }
 0xa26   : > { %v1412_v9 = vmul.f32 %v3832_v4, %v4723_v46  ;;  %v2833_v46 = vld [vmem:[#allocation11 + $0x8] sm:$0xff]  ;;  %v2988_v63 = vld [vmem:[%s5076_s18 + $0x8] sm:$0xff] }
 0xa27   : > { %v3590_v18 = vpack.c.bf16 %v2833_v46, %v2832_v1  ;;  %v2989_v4 = vld [vmem:[%s5076_s18 + $0x10] sm:$0xff] }
 0xa29   : > { %3591 = vmatprep.subr.bf16.mxu1 %v3590_v18 }
 0xa2a   : > { %3593 = vmatpush3.bf16.msra.mxu1 %v3590_v18 }
 0xa70   : > { %v2086_v38 = vpop.permute.xlu1 %2085 }
 0xa71   : > { %v2097_v47 = vsel %vm748_vm2, %v1409_v58, %v2086_v38 }
 0xa91   : > { %v2088_v52 = vpop.permute.xlu0 %2087 }
 0xa92   : > { %v2098_v53 = vsel %vm748_vm2, %v1410_v57, %v2088_v52 }
 0xa95   : > { %v2090_v8 = vpop.permute.xlu0 %2089 }
 0xa96   : > { %v2099_v11 = vsel %vm748_vm2, %v1411_v48, %v2090_v8  ;;  %v2990_v8 = vld [vmem:[%s5076_s18 + $0x18] sm:$0xff] }
 0xa97   : > { %v3598_v48 = vpack.c.bf16 %v2990_v8, %v2989_v4 }
 0xaa9   : > { %v3536_v6 = vpop.f32.mrb[22].mxu1 }
 0xaaa   : > { %v2686_v42 = vadd.f32 %v3536_v6, %v3322_v14  ;;  %v2680_v28 = vpop.f32.mrb[23].mxu1 }
 0xaab   : > { %v2681_v29 = vadd.f32 %v3322_v14, %v2680_v28 }
 0xaac   : > { %2705 = vrot.lane.b32.xlu1 %v2686_v42, %s4179_s8 }
 0xab0   : > { %2703 = vrot.lane.b32.xlu1 %v2681_v29, %s4179_s8 }
 0xab4   : > { %2091 = vrot.lane.b32.xlu1 %v2080_v30, %s4178_s26  ;;  %s4079_s26 = scalar_lea.vmem %s4078_s29, 1024 }
 0xab5   : > { %p4081_p6 = scmp.lt.s32.totalorder %s4079_s26, %s4073_s25 }
 0xab7   : > { %p4082_p5 = por %p4081_p6, %p4080_p0 }
 0xab9   : > { %p4083_p9 = pnand %p4082_p5, %p4076_p1 }
 0xaba   : > { %v3539_v51 = vpop.f32.mrb[24].mxu1 }
 0xabb   : > { %v2696_v31 = vadd.f32 %v3539_v51, %v3322_v14  ;;  %v2690_v32 = vpop.f32.mrb[25].mxu1 }
 0xabc   : > { %v2691_v33 = vadd.f32 %v3322_v14, %v2690_v32 }
 0xabd   : > { %2709 = vrot.lane.b32.xlu1 %v2696_v31, %s4179_s8 }
 0xabe   : > { %2707 = vrot.lane.b32.xlu0 %v2691_v33, %s4179_s8 }
 0xb1e   : > { %v2706_v45 = vpop.permute.xlu1 %2705 }
 0xb1f   : > { %v4904_v2 = vsel %vm642_vm0, %v2098_v53, %v2706_v45  ;;  %v2987_v53 = vld [vmem:[%s5075_s21] sm:$0xff]  ;;  %s4965_s21 = scalar_lea.sflag [#allocation4], %s618_s27 }
 0xb22   : > { %v2704_v61 = vpop.permute.xlu1 %2703 }
 0xb23   : > { %v4901_v0 = vsel %vm642_vm0, %v2097_v47, %v2704_v61 }
 0xb24   : > { %3548 = vmatprep.mubr.msk.f32.mxu0 %vm2730_vm11, %v4901_v0 }
 0xb25   : > { %3549 = vmatmul.mubr.msk.f32.vlgmr.msra.gmra.mrb[22].mxu0 %vm2730_vm11, %v4904_v2 }
 0xb26   : > { %v2092_v44 = vpop.permute.xlu1 %2091 }
 0xb27   : > { %v2100_v12 = vsel %vm748_vm2, %v1412_v9, %v2092_v44  ;;  %v3594_v44 = vpack.c.bf16 %v2988_v63, %v2987_v53 }
 0xb29   : > { %3595 = vmatprep.subr.bf16.mxu0 %v3594_v44 }
 0xb2a   : > { %3597 = vmatpush3.bf16.msra.mxu0 %v3594_v44 }
 0xb2b   : > { %3599 = vmatprep.subr.bf16.mxu0 %v3598_v48 }
 0xb2e   : > { %3601 = vmatpush3.bf16.msra.mxu0 %v3598_v48 }
 0xb2f   : > { %v2710_v10 = vpop.permute.xlu1 %2709 }
 0xb30   : > { %v2708_v26 = vpop.permute.xlu0 %2707  ;;  %v4918_v15 = vsel %vm642_vm0, %v2100_v12, %v2710_v10 }
 0xb31   : > { %v4915_v13 = vsel %vm642_vm0, %v2099_v11, %v2708_v26 }
 0xb32   : > { %3551 = vmatprep.mubr.msk.f32.mxu0 %vm2730_vm11, %v4915_v13 }
 0xb33   : > { %3552 = vmatmul.mubr.msk.f32.gmra.mrb[24].mxu0 %vm2730_vm11, %v4918_v15 }
 0xbf8   : > { %v3550_v20 = vpop.f32.mrb[22].mxu0 }
 0xbf9   : > { %v2815_v17 = vadd.f32 %v3550_v20, %v3327_v19  ;;  %v2809_v21 = vpop.f32.mrb[23].mxu0 }
 0xbfa   : > { %v2810_v5 = vadd.f32 %v3327_v19, %v2809_v21 }
 0xbfb   : > { %v2829_v54 = vmax.f32 %v2815_v17, 0.0 }
 0xbfc   : > { %v2828_v24 = vmax.f32 %v2810_v5, 0.0 }
 0xbfe   : > { %3558 = vmatprep.mubr.msk.f32.mxu1 %vm2841_vm12, %v2828_v24 }
 0xbff   : > { %3559 = vmatmul.mubr.msk.f32.vlgmr.msra.gmra.mrb[26].mxu1 %vm2841_vm12, %v2829_v54 }
 0xc06   : > { %v3553_v59 = vpop.f32.mrb[24].mxu0 }
 0xc07   : > { %v2825_v36 = vadd.f32 %v3553_v59, %v3327_v19  ;;  %v2819_v23 = vpop.f32.mrb[25].mxu0 }
 0xc08   : > { %v2820_v40 = vadd.f32 %v3327_v19, %v2819_v23 }
 0xc09   : > { %v2831_v55 = vmax.f32 %v2825_v36, 0.0 }
 0xc0a   : > { %v2830_v50 = vmax.f32 %v2820_v40, 0.0 }
 0xc0c   : > { %3561 = vmatprep.mubr.msk.f32.mxu1 %vm2841_vm12, %v2830_v50 }
 0xc0d   : > { %3562 = vmatmul.mubr.msk.f32.gmra.mrb[28].mxu1 %vm2841_vm12, %v2831_v55 }
 0xcd2   : > { %v3560_v25 = vpop.f32.mrb[26].mxu1 }
 0xcd3   : > { %v2926_v60 = vadd.f32 %v3560_v25, %v3332_v22  ;;  %v2920_v27 = vpop.f32.mrb[27].mxu1 }
 0xcd4   : > { %v2921_v7 = vadd.f32 %v3332_v22, %v2920_v27 }
 0xcd5   : > { %v2942_v56 = vsel %vm2730_vm11, %v2926_v60, -inf }
 0xcd6   : > { %2943 = vmax.xlane.f32.xlu1 %v2942_v56  ;;  %v2939_v62 = vsel %vm2730_vm11, %v2921_v7, -inf }
 0xcd7   : > { %2940 = vmax.xlane.f32.xlu0 %v2939_v62 }
 0xce0   : > { %v3563_v3 = vpop.f32.mrb[28].mxu1 }
 0xce1   : > { %v2930_v16 = vpop.f32.mrb[29].mxu1  ;;  %v2936_v6 = vadd.f32 %v3563_v3, %v3332_v22 }
 0xce2   : > { %v2931_v14 = vadd.f32 %v3332_v22, %v2930_v16 }
 0xce3   : > { %v2948_v28 = vsel %vm2730_vm11, %v2936_v6, -inf }
 0xce4   : > { %v2945_v42 = vsel %vm2730_vm11, %v2931_v14, -inf }
 0xce5   : > { %2946 = vmax.xlane.f32.xlu0 %v2945_v42 }
 0xce9   : > { %2949 = vmax.xlane.f32.xlu0 %v2948_v28 }
 0xd63   : > { %v2944_v29 = vpop.xlane.xlu1 %2943 }
 0xd64   : > { %v2952_v49 = vsub.f32 %v2926_v60, %v2944_v29  ;;  %v2941_v30 = vpop.xlane.xlu0 %2940 }
 0xd65   : > { %v2951_v51 = vsub.f32 %v2921_v7, %v2941_v30 }
 0xd66   : > { %v2957_v31 = vmul.f32 1.442695, %v2952_v49 }
 0xd67   : > { %v2955_v32 = vmul.f32 1.442695, %v2951_v51 }
 0xd68   : > { %3833 = vpow2.f32 %v2957_v31 }
 0xd69   : > { %3835 = vpow2.f32 %v2955_v32 }
 0xd72   : > { %v3834_v33 = vpop.eup %3833  ;;  %v2947_v34 = vpop.xlane.xlu0 %2946 }
 0xd73   : > { %v3836_v35 = vpop.eup %3835  ;;  %v2953_v37 = vsub.f32 %v2931_v14, %v2947_v34  ;;  %v2966_v38 = vsel %vm2730_vm11, %v3834_v33, 0.0 }
 0xd74   : > { %2967 = vadd.xlane.f32.xlu0 %v2966_v38  ;;  %v2963_v39 = vsel %vm2730_vm11, %v3836_v35, 0.0 }
 0xd75   : > { %v2959_v41 = vmul.f32 1.442695, %v2953_v37  ;;  %2964 = vadd.xlane.f32.xlu1 %v2963_v39 }
 0xd76   : > { %v2950_v43 = vpop.xlane.xlu0 %2949 }
 0xd77   : > { %3837 = vpow2.f32 %v2959_v41  ;;  %v2954_v45 = vsub.f32 %v2936_v6, %v2950_v43 }
 0xd79   : > { %v2961_v58 = vmul.f32 1.442695, %v2954_v45 }
 0xd7b   : > { %3839 = vpow2.f32 %v2961_v58 }
 0xd81   : > { %v3838_v52 = vpop.eup %3837 }
 0xd82   : > { %v2969_v57 = vsel %vm2730_vm11, %v3838_v52, 0.0 }
 0xd83   : > { %2970 = vadd.xlane.f32.xlu1 %v2969_v57 }
 0xd85   : > { %v3840_v47 = vpop.eup %3839 }
 0xd86   : > { %v2972_v61 = vsel %vm2730_vm11, %v3840_v47, 0.0 }
 0xd87   : > { %2973 = vadd.xlane.f32.xlu0 %v2972_v61 }
 0xe01   : > { %v2968_v9 = vpop.xlane.xlu0 %2967 }
 0xe02   : > { %3841 = vrcp.f32 %v2968_v9  ;;  %v2965_v10 = vpop.xlane.xlu1 %2964 }
 0xe03   : > { %3843 = vrcp.f32 %v2965_v10 }
 0xe0c   : > { %v3842_v11 = vpop.eup %3841 }
 0xe0d   : > { %v3844_v26 = vpop.eup %3843  ;;  %v2980_v12 = vmul.f32 %v3842_v11, %v3834_v33 }
 0xe0e   : > { %v2979_v1 = vmul.f32 %v3844_v26, %v3836_v35 }
 0xe0f   : > { %v2984_v19 = vmul.f32 %v2980_v12, %v4904_v2  ;;  %v3337_v2 = vld [vmem:[#allocation14] ss:$0 sm:$0xff] }
 0xe10   : > { %v2971_v46 = vpop.xlane.xlu1 %2970  ;;  %v2983_v18 = vmul.f32 %v2979_v1, %v4901_v0 }
 0xe11   : > { %3845 = vrcp.f32 %v2971_v46 }
 0xe12   : > { %3572 = vmatprep.mubr.msk.f32.mxu0 %vm2730_vm11, %v2983_v18 }
 0xe13   : > { %3573 = vmatmul.mubr.msk.f32.vlgmr.msra.gmra.mrb[26].mxu0 %vm2730_vm11, %v2984_v19 }
 0xe14   : > { %v2974_v20 = vpop.xlane.xlu0 %2973 }
 0xe15   : > { %3847 = vrcp.f32 %v2974_v20 }
 0xe1b   : > { %v3846_v17 = vpop.eup %3845 }
 0xe1c   : > { %v2981_v21 = vmul.f32 %v3846_v17, %v3838_v52 }
 0xe1e   : > { %v2985_v5 = vmul.f32 %v2981_v21, %v4915_v13 }
 0xe1f   : > { %v3848_v24 = vpop.eup %3847 }
 0xe20   : > { %3575 = vmatprep.mubr.msk.f32.mxu0 %vm2730_vm11, %v2985_v5  ;;  %v2982_v54 = vmul.f32 %v3848_v24, %v3840_v47 }
 0xe22   : > { %v2986_v0 = vmul.f32 %v2982_v54, %v4918_v15 }
 0xe24   : > { %3576 = vmatmul.mubr.msk.f32.gmra.mrb[28].mxu0 %vm2730_vm11, %v2986_v0 }
 0xee6   : > { %v3574_v59 = vpop.f32.mrb[26].mxu0 }
 0xee7   : > { %v3082_v36 = vadd.f32 %v3574_v59, %v3337_v2  ;;  %v3076_v23 = vpop.f32.mrb[27].mxu0 }
 0xee8   : > { %v3077_v40 = vadd.f32 %v3337_v2, %v3076_v23 }
 0xee9   : > { %3096 = vst.msk [vmem:[%s620_s28 + $0x8] sm:$0xff] %vm2730_vm11, %v3082_v36 }
 0xeea   : > { %3095 = vst.msk [vmem:[%s620_s28] sm:$0xff] %vm2730_vm11, %v3077_v40 }
 0xef7   : > { %v3577_v13 = vpop.f32.mrb[28].mxu0 }
 0xef8   : > { %v3092_v15 = vadd.f32 %v3577_v13, %v3337_v2  ;;  %v3086_v50 = vpop.f32.mrb[29].mxu0 }
 0xef9   : > { %v3087_v55 = vadd.f32 %v3337_v2, %v3086_v50 }
 0xefa   : > { %3098 = vst.msk [vmem:[%s620_s28 + $0x18] sm:$0xff] %vm2730_vm11, %v3092_v15 }
 0xefb   : > { %3097 = vst.msk [vmem:[%s620_s28 + $0x10] sm:$0xff] %vm2730_vm11, %v3087_v55 }
 0xefc   : > { %4086 = shalt.err (!%p4083_p9)
}
 0xefd   : > { %s4087_s0 = scalar_lea.hbm %s4961_s14, 512  ;;  %s4091_s30 = scalar_lea.hbm %s5079_s5, 1024 }
 0xefe   : > { %p4088_p12 = scmp.ne.s32.totalorder %s4961_s14, %s4087_s0  ;;  %p4092_p3 = scmp.lt.u32.totalorder %s4961_s14, %s5079_s5 }
 0xeff   : > { %p4093_p4 = scmp.lt.u32.totalorder %s4091_s30, %s4087_s0  ;;  %p4095_p8 = scmp.lt.u32.totalorder %s4087_s0, %s4961_s14 }
 0xf00   : > { %p4089_p10 = pnand %p4088_p12, %p5080_p11 }
 0xf01   : > { %p4094_p7 = por %p4093_p4, %p4092_p3 }
 0xf02   : > { %p4090_p2 = pneg %p4089_p10 }
 0xf03   : > { %p4096_p13 = por %p4095_p8, %p4094_p7 }
 0xf05   : > { %p4097_p1 = pnand %p4096_p13, %p4090_p2 }
 0xf07   : > { %4100 = shalt.err (!%p4097_p1)
}
 0xf08   : > { %s4181_s28 = smov 128   ;;  %s4182_s23 = smov 8  }
 0xf09   : > { %3634 = dma.vmem_to_hbm [thread:$0]  (%p5080_p11), %s4956_s17, 512, %s4961_s14, %s4965_s21, %s4181_s28, %s4181_s28, %s4182_s23  }
 0xf0a PF: > { %s5081_s9 = sld [smem:[#allocation26_spill]]  ;;  %s5082_s8 = sld [smem:[#allocation23_spill]] }
 0xf0b   : > { %s5083_s25 = sld [smem:[#allocation30_spill]] }
 0xf10   : > { %p3681_p0 = scmp.ge.s32.totalorder %s5081_s9, 2  ;;  %s3128_s24 = sand.u32 1, %s5082_s8  }
 0xf11   : > { %p5084_p6 = scmp.ne.s32.totalorder %s5083_s25, 0  ;;  %s3129_s29 = scalar_lea.sflag [#allocation4], %s3128_s24 }
 0xf13   : > { %p3662_p5 = pnand %p3681_p0, %p5084_p6 }
 0xf15   : > { %4138 = dma.done.wait (!%p3662_p5), %s3129_s29, 512  }
 0xf16   : > { %4140 = vsyncadd (!%p3662_p5), %s3129_s29, 4294966784  ;;  %s5085_s24 = sld [smem:[#allocation27_spill]]  ;;  %s5086_s21 = sld [smem:[#allocation24_spill]] }
 0xf17   : > { %s5087_s22 = sld [smem:[#allocation25_spill]]  ;;  %s5088_s23 = sld [smem:[#allocation28_spill]] }
 0xf1c   : > { %p31_p9 = scmp.ge.s32.totalorder %s5085_s24, 4  }
 0xf1e   :  { %33 = sbr.rel (!%p31_p9) target bundleno = 15 (0xf), region = 152 }
 0xf25   :  { %3134 = vsyncpa [#allocation3], 1 }
 0xf26   :  { %3136 = vsyncpa [#allocation3 + $0x1], 1 }
 0xf27   :  { %3137 = vsyncpa [#allocation6], 1 }
 0xf28   :  { %3138 = vsyncpa [#allocation9], 1 }
 0xf29   :  { %3139 = vsyncpa [#allocation12], 1 }
 0xf2a   :  { %3140 = vsyncpa [#allocation15], 1 }
 0xf2b   :  { %3141 = vsyncpa [#allocation4], 1 }
 0xf2c   :  { %3143 = vsyncpa [#allocation4 + $0x1], 1 }

</bundles_post_ra>
